<compile_context>
chip_gen: v6e
topology: v6e:2x2x1
jax: 0.10.0
libtpu: 0.0.40
codegen_flags: <defaults>
</compile_context>

<pallas_src>
import jax
import jax.numpy as jnp
from jax.experimental import pallas as pl
from jax.experimental.pallas import tpu as pltpu

# ---- synthetic, small hyperparameters (consistent with the module's __init__) ----
INPUT_DIM = 32
CONV_FILTERS = [32, 32, 32, 32]      # kernel sizes 1, 3, 5, 7 ; 'same' paddings 0,1,2,3
INTERMEDIATE_DIM = 128
HIGHWAY_LAYERS = 2
FF_LAYERS = 2
MAX_POOL_WINDOW = 5
LN_EPS = 1e-5                        # nn.LayerNorm default eps

CONV_COUNT = len(CONV_FILTERS)
PAD_MAX = CONV_COUNT - 1             # widest conv needs this much left/right padding
KTAPS = 2 * CONV_COUNT - 1           # 7 taps cover all conv receptive fields
COMPUTE_DTYPE = jnp.bfloat16         # MXU input dtype (f32 accumulation)


def _round_up(a, b):
    return -(-a // b) * b


# --------------------------------------------------------------------------- params
def init_params(key):
    keys = iter(jax.random.split(key, 64))
    D = INTERMEDIATE_DIM
    p = {}
    convs = []
    for i, f in enumerate(CONV_FILTERS):
        ksize = 2 * i + 1
        w = 0.1 * jax.random.normal(next(keys), (ksize, INPUT_DIM, f), jnp.float32)
        b = 0.1 * jax.random.normal(next(keys), (1, f), jnp.float32)
        convs.append((w, b))
    p["convs"] = convs
    sum_f = sum(CONV_FILTERS)
    p["after_cnn_w"] = 0.1 * jax.random.normal(next(keys), (sum_f, D), jnp.float32)
    p["after_cnn_b"] = 0.1 * jax.random.normal(next(keys), (1, D), jnp.float32)
    highways = []
    for _ in range(HIGHWAY_LAYERS):
        wp = 0.1 * jax.random.normal(next(keys), (D, D), jnp.float32)
        bp = 0.1 * jax.random.normal(next(keys), (1, D), jnp.float32)
        wt = 0.1 * jax.random.normal(next(keys), (D, D), jnp.float32)
        bt = jnp.full((1, D), -2.0, jnp.float32)      # transform.bias.data.fill_(-2.0)
        highways.append((wp, bp, wt, bt))
    p["highways"] = highways
    p["ah_gamma"] = jnp.ones((1, D), jnp.float32)     # LayerNorm default init
    p["ah_beta"] = jnp.zeros((1, D), jnp.float32)
    ffs = []
    for _ in range(FF_LAYERS):
        w1 = 0.1 * jax.random.normal(next(keys), (D, 2 * D), jnp.float32)
        b1 = 0.1 * jax.random.normal(next(keys), (1, 2 * D), jnp.float32)
        w2 = 0.1 * jax.random.normal(next(keys), (2 * D, D), jnp.float32)
        b2 = 0.1 * jax.random.normal(next(keys), (1, D), jnp.float32)
        ffs.append((w1, b1, w2, b2,
                    jnp.ones((1, D), jnp.float32), jnp.zeros((1, D), jnp.float32)))
    p["ffs"] = ffs
    return p


def fold_params(params, compute_dtype=COMPUTE_DTYPE):
    """Fold char convs + concat + after_cnn 1x1 conv into one [7*Cin, D] matrix, and
    fuse each highway layer's (proj, transform) into one [D, 2D] matrix (N=256 MXU)."""
    D = params["after_cnn_w"].shape[-1]
    Cin = params["convs"][0][0].shape[1]
    w_merged = jnp.zeros((KTAPS, Cin, D), jnp.float32)
    b_merged = params["after_cnn_b"].astype(jnp.float32)          # [1, D]
    off = 0
    for i, (w, b) in enumerate(params["convs"]):                  # w: [2i+1, Cin, F]
        f = w.shape[-1]
        wa_i = params["after_cnn_w"][off:off + f]                 # [F, D]
        # conv i ('same' pad i) tap j hits im2col tap t = PAD_MAX - i + j
        w_merged = w_merged.at[PAD_MAX - i:PAD_MAX + i + 1].add(
            jnp.einsum("kcf,fd->kcd", w, wa_i))
        b_merged = b_merged + b @ wa_i
        off += f
    highways = []
    for (wp, bp, wt, bt) in params["highways"]:
        highways.append((jnp.concatenate([wp, wt], axis=1).astype(compute_dtype),  # [D,2D]
                         jnp.concatenate([bp, bt], axis=1)))                       # [1,2D] f32
    return {
        "conv_w": w_merged.reshape(KTAPS * Cin, D).astype(compute_dtype),
        "conv_b": b_merged,                                       # f32 [1, D]
        "highways": highways,
        "ah_gamma": params["ah_gamma"], "ah_beta": params["ah_beta"],
        "ffs": [(w1.astype(compute_dtype), b1, w2.astype(compute_dtype), b2, g, bb)
                for (w1, b1, w2, b2, g, bb) in params["ffs"]],
    }


# --------------------------------------------------------------------------- kernel
def _build_fused_kernel(n_highway, n_ff, pool_w):
    def kernel(*refs):
        it = iter(refs)
        xph_ref = next(it)           # [W, TILE_P, 7*Cin] bf16 pool-phase-major im2col
        wconv_ref = next(it)         # [7*Cin, D] bf16  (folded convs + after_cnn)
        bconv_ref = next(it)         # [1, D]     f32   (folded bias)
        highways = [(next(it), next(it)) for _ in range(n_highway)]  # ([D,2D], [1,2D])
        ahg_ref = next(it)           # [1, D]
        ahb_ref = next(it)           # [1, D]
        ffs = [tuple(next(it) for _ in range(6)) for _ in range(n_ff)]
        out_ref = next(it)           # [TILE_P, D] f32 (lane-dense)

        f32 = jnp.float32
        cdt = wconv_ref.dtype
        D = wconv_ref.shape[-1]

        def layer_norm(z):
            mean = jnp.mean(z, axis=-1, keepdims=True)
            var = jnp.mean(jnp.square(z - mean), axis=-1, keepdims=True)
            return (z - mean) * jax.lax.rsqrt(var + LN_EPS)

        # (1)+(2) folded char convs (k=1,3,5,7,'same') + after_cnn 1x1 + ReLU fused
        # with MaxPool1d(W, W, ceil_mode=True): one contiguous [TILE_P,224]@[224,128]
        # matmul per pool phase, folded with a running max (ReLU and max commute).
        # No scratch, no strided sublane reads, accumulator stays in registers.
        wconv = wconv_ref[...]
        bconv = bconv_ref[...]
        s = jnp.maximum(
            jnp.dot(xph_ref[0], wconv, preferred_element_type=f32) + bconv, 0.0)
        for k in range(1, pool_w):
            hk = jnp.maximum(
                jnp.dot(xph_ref[k], wconv, preferred_element_type=f32) + bconv, 0.0)
            s = jnp.maximum(s, hk)

        # (3) highway layers: sigmoid(Wt x + bt)*relu(Wp x + bp) + (1-gate)*x
        #     proj || transform fused into a single N=2D matmul (fills 256-wide MXU).
        for wpg_ref, bpg_ref in highways:
            pg = jnp.dot(s.astype(cdt), wpg_ref[...],
                         preferred_element_type=f32) + bpg_ref[...]
            proj = jnp.maximum(pg[:, :D], 0.0)          # lane-aligned split (128)
            gate = jax.nn.sigmoid(pg[:, D:])
            s = gate * proj + (1.0 - gate) * s

        # (4) after_highways: ReLU -> (dropout = identity) -> LayerNorm
        s = jnp.maximum(s, 0.0)
        s = layer_norm(s) * ahg_ref[...] + ahb_ref[...]

        # (5) TransformerFeedForward blocks: LN(W2 relu(W1 x + b1) + b2 + x)
        for w1_ref, b1_ref, w2_ref, b2_ref, g_ref, b_ref in ffs:
            mid = jnp.maximum(
                jnp.dot(s.astype(cdt), w1_ref[...], preferred_element_type=f32)
                + b1_ref[...], 0.0)
            y = jnp.dot(mid.astype(cdt), w2_ref[...],
                        preferred_element_type=f32) + b2_ref[...]
            s = layer_norm(y + s) * g_ref[...] + b_ref[...]

        out_ref[...] = s

    return kernel


# --------------------------------------------------------------------------- forward
@jax.jit
def char_to_pseudo_word(x, mask, fp):
    """x: [B, L, INPUT_DIM], mask: [B, L] -> (output [B, ceil(L/W), D], mask [B, ceil(L/W)])."""
    B, L, Cin = x.shape
    D = fp["conv_w"].shape[-1]
    W = MAX_POOL_WINDOW
    Lc = -(-L // W)                                   # ceil_mode=True
    Lp = Lc * W
    Np = B * Lc                                       # pooled rows
    # Large pooled-row tile (amortizes per-step overhead and MXU weight pushes),
    # multiple of 16 (bf16 sublane packing), capped so the grid has >= 2 tiles
    # whenever Np allows it (v7x has 2 TensorCores; axis is "parallel").
    TILE_P = max(16, min(512, _round_up(-(-Np // 2), 16)))
    Np_pad = _round_up(Np, TILE_P)
    cdt = fp["conv_w"].dtype

    # ---- XLA prologue (fused pads / elementwise / relayout) -----------------------
    # mask multiply + 7-tap im2col ('same' padding, is_decoder=False) + ceil-mode
    # edge replication + pool-phase-major relayout.
    # ceil_mode=True is realized by edge-replicating position L-1: its conv output
    # already belongs to the last (partial) pool window, so the window max is
    # unchanged.  This assumes non-causal ('same') padding (is_decoder=False).
    xm = x * mask[:, :, None]                         # embedded_chars * conv_mask
    xpad = jnp.pad(xm, ((0, 0), (PAD_MAX, PAD_MAX), (0, 0)))
    xcol = jnp.concatenate([xpad[:, t:t + L, :] for t in range(KTAPS)], axis=-1)
    xcol = jnp.pad(xcol, ((0, 0), (0, Lp - L), (0, 0)), mode="edge")     # [B, Lp, 7C]
    xph = xcol.reshape(B, Lc, W, KTAPS * Cin)
    xph = jnp.transpose(xph, (2, 0, 1, 3)).reshape(W, Np, KTAPS * Cin)   # phase-major
    xph = jnp.pad(xph, ((0, 0), (0, Np_pad - Np), (0, 0))).astype(cdt)

    # final_mask_shrink = MaxPool1d(W, W, ceil_mode=True) on the 0/1 mask: trivial
    # fused XLA reduce (keeps the kernel output lane-dense, no 1-lane vst.msk).
    mpool = jnp.pad(mask.astype(jnp.float32), ((0, 0), (0, Lp - L)))
    shrinked_mask = mpool.reshape(B, Lc, W).max(axis=-1)

    # TODO(synk): intermediate_cnns / GLU blocks not instantiated (intermediate_cnn_layers=0 default)
    # NOTE: streaming raw masked x (32-wide) and building the im2col in VMEM would cut
    # the kernel's input stream ~7x, but at Cin=32 the in-kernel lane-concat/relayout
    # cost is comparable to the HBM bytes saved, so the im2col stays in the fused XLA
    # prologue, laid out pool-phase-major so the kernel only sees contiguous slabs.

    weight_args = [fp["conv_w"], fp["conv_b"]]
    for wpg, bpg in fp["highways"]:
        weight_args += [wpg, bpg]
    weight_args += [fp["ah_gamma"], fp["ah_beta"]]
    for w1, b1, w2, b2, g, b in fp["ffs"]:
        weight_args += [w1, b1, w2, b2, g, b]

    in_specs = (
        [pl.BlockSpec((W, TILE_P, KTAPS * Cin), lambda i: (0, i, 0))]      # im2col (tiled)
        + [pl.BlockSpec(a.shape, lambda i: (0, 0)) for a in weight_args]   # VMEM-resident
    )
    out_specs = pl.BlockSpec((TILE_P, D), lambda i: (i, 0))                # lane-dense
    out_shape = jax.ShapeDtypeStruct((Np_pad, D), jnp.float32)

    kernel = _build_fused_kernel(len(fp["highways"]), len(fp["ffs"]), W)

    out2d = pl.pallas_call(
        kernel,
        grid=(Np_pad // TILE_P,),
        in_specs=in_specs,
        out_specs=out_specs,
        out_shape=out_shape,
        compiler_params=pltpu.CompilerParams(
            dimension_semantics=("parallel",)),        # shard row tiles across TCs (v7x)
    )(xph, *weight_args)

    output = out2d[:Np].reshape(B, Lc, D)
    return output, shrinked_mask


# --------------------------------------------------------------------------- main
if __name__ == "__main__":
    key = jax.random.PRNGKey(0)
    kx, kp = jax.random.split(key, 2)

    B, L = 2, 40
    x = jax.random.normal(kx, (B, L, INPUT_DIM), jnp.float32)
    lengths = jnp.array([40, 33], dtype=jnp.int32)
    mask = (jnp.arange(L)[None, :] < lengths[:, None]).astype(jnp.float32)

    params = init_params(kp)
    fparams = fold_params(params, COMPUTE_DTYPE)

    out, shrunk_mask = char_to_pseudo_word(x, mask, fparams)
    out = jax.block_until_ready(out)
    shrunk_mask = jax.block_until_ready(shrunk_mask)

    Lc = -(-L // MAX_POOL_WINDOW)
    assert out.shape == (B, Lc, INTERMEDIATE_DIM), out.shape
    assert shrunk_mask.shape == (B, Lc), shrunk_mask.shape
    assert bool(jnp.all(jnp.isfinite(out)))
    print("KERNEL_OK")
</pallas_src>

<mosaic_0001>
module attributes {stable_mosaic.version = 11 : i64} {
  func.func @kernel(%arg0: i32, %arg1: memref<5x16x224xbf16, #tpu.memory_space<vmem>>, %arg2: memref<224x128xbf16, #tpu.memory_space<vmem>>, %arg3: memref<1x128xf32, #tpu.memory_space<vmem>>, %arg4: memref<128x256xbf16, #tpu.memory_space<vmem>>, %arg5: memref<1x256xf32, #tpu.memory_space<vmem>>, %arg6: memref<128x256xbf16, #tpu.memory_space<vmem>>, %arg7: memref<1x256xf32, #tpu.memory_space<vmem>>, %arg8: memref<1x128xf32, #tpu.memory_space<vmem>>, %arg9: memref<1x128xf32, #tpu.memory_space<vmem>>, %arg10: memref<128x256xbf16, #tpu.memory_space<vmem>>, %arg11: memref<1x256xf32, #tpu.memory_space<vmem>>, %arg12: memref<256x128xbf16, #tpu.memory_space<vmem>>, %arg13: memref<1x128xf32, #tpu.memory_space<vmem>>, %arg14: memref<1x128xf32, #tpu.memory_space<vmem>>, %arg15: memref<1x128xf32, #tpu.memory_space<vmem>>, %arg16: memref<128x256xbf16, #tpu.memory_space<vmem>>, %arg17: memref<1x256xf32, #tpu.memory_space<vmem>>, %arg18: memref<256x128xbf16, #tpu.memory_space<vmem>>, %arg19: memref<1x128xf32, #tpu.memory_space<vmem>>, %arg20: memref<1x128xf32, #tpu.memory_space<vmem>>, %arg21: memref<1x128xf32, #tpu.memory_space<vmem>>, %arg22: memref<16x128xf32, #tpu.memory_space<vmem>>) attributes {dimension_semantics = [#tpu.dimension_semantics<parallel>], iteration_bounds = array<i64: 1>, scalar_prefetch = 0 : i64, scratch_operands = 0 : i64, tpu.core_type = #tpu.core_type<tc>, window_params = [{transform_indices = @transform_0, window_bounds = array<i64: 5, 16, 224>}, {pipeline_mode = #tpu.pipeline_mode<synchronous>, transform_indices = @transform_1, window_bounds = array<i64: 224, 128>}, {pipeline_mode = #tpu.pipeline_mode<synchronous>, transform_indices = @transform_2, window_bounds = array<i64: 1, 128>}, {pipeline_mode = #tpu.pipeline_mode<synchronous>, transform_indices = @transform_3, window_bounds = array<i64: 128, 256>}, {pipeline_mode = #tpu.pipeline_mode<synchronous>, transform_indices = @transform_4, window_bounds = array<i64: 1, 256>}, {pipeline_mode = #tpu.pipeline_mode<synchronous>, transform_indices = @transform_5, window_bounds = array<i64: 128, 256>}, {pipeline_mode = #tpu.pipeline_mode<synchronous>, transform_indices = @transform_6, window_bounds = array<i64: 1, 256>}, {pipeline_mode = #tpu.pipeline_mode<synchronous>, transform_indices = @transform_7, window_bounds = array<i64: 1, 128>}, {pipeline_mode = #tpu.pipeline_mode<synchronous>, transform_indices = @transform_8, window_bounds = array<i64: 1, 128>}, {pipeline_mode = #tpu.pipeline_mode<synchronous>, transform_indices = @transform_9, window_bounds = array<i64: 128, 256>}, {pipeline_mode = #tpu.pipeline_mode<synchronous>, transform_indices = @transform_10, window_bounds = array<i64: 1, 256>}, {pipeline_mode = #tpu.pipeline_mode<synchronous>, transform_indices = @transform_11, window_bounds = array<i64: 256, 128>}, {pipeline_mode = #tpu.pipeline_mode<synchronous>, transform_indices = @transform_12, window_bounds = array<i64: 1, 128>}, {pipeline_mode = #tpu.pipeline_mode<synchronous>, transform_indices = @transform_13, window_bounds = array<i64: 1, 128>}, {pipeline_mode = #tpu.pipeline_mode<synchronous>, transform_indices = @transform_14, window_bounds = array<i64: 1, 128>}, {pipeline_mode = #tpu.pipeline_mode<synchronous>, transform_indices = @transform_15, window_bounds = array<i64: 128, 256>}, {pipeline_mode = #tpu.pipeline_mode<synchronous>, transform_indices = @transform_16, window_bounds = array<i64: 1, 256>}, {pipeline_mode = #tpu.pipeline_mode<synchronous>, transform_indices = @transform_17, window_bounds = array<i64: 256, 128>}, {pipeline_mode = #tpu.pipeline_mode<synchronous>, transform_indices = @transform_18, window_bounds = array<i64: 1, 128>}, {pipeline_mode = #tpu.pipeline_mode<synchronous>, transform_indices = @transform_19, window_bounds = array<i64: 1, 128>}, {pipeline_mode = #tpu.pipeline_mode<synchronous>, transform_indices = @transform_20, window_bounds = array<i64: 1, 128>}, {transform_indices = @transform_21, window_bounds = array<i64: 16, 128>}]} {
    %c0 = arith.constant 0 : index
    %c0_0 = arith.constant 0 : index
    %0 = vector.load %arg2[%c0, %c0_0] : memref<224x128xbf16, #tpu.memory_space<vmem>>, vector<224x128xbf16>
    %c0_1 = arith.constant 0 : index
    %c0_2 = arith.constant 0 : index
    %1 = vector.load %arg3[%c0_1, %c0_2] : memref<1x128xf32, #tpu.memory_space<vmem>>, vector<1x128xf32>
    %c0_3 = arith.constant 0 : index
    %c0_4 = arith.constant 0 : index
    %c0_5 = arith.constant 0 : index
    %2 = vector.load %arg1[%c0_3, %c0_4, %c0_5] : memref<5x16x224xbf16, #tpu.memory_space<vmem>>, vector<1x16x224xbf16>
    %3 = vector.shape_cast %2 : vector<1x16x224xbf16> to vector<16x224xbf16>
    %cst = arith.constant dense<0.000000e+00> : vector<16x128xf32>
    %4 = tpu.matmul %3, %0, %cst {dimension_numbers = #tpu.dot_dimension_numbers<[1], [0], [0], [1], [0, 0, 1, 1], [], []>} : vector<16x224xbf16>, vector<224x128xbf16>, vector<16x128xf32> -> vector<16x128xf32>
    %5 = vector.broadcast %1 : vector<1x128xf32> to vector<16x128xf32>
    %6 = arith.addf %4, %5 : vector<16x128xf32>
    %cst_6 = arith.constant 0.000000e+00 : f32
    %7 = vector.broadcast %cst_6 : f32 to vector<16x128xf32>
    %8 = arith.maximumf %6, %7 : vector<16x128xf32>
    %c1 = arith.constant 1 : index
    %c0_7 = arith.constant 0 : index
    %c0_8 = arith.constant 0 : index
    %9 = vector.load %arg1[%c1, %c0_7, %c0_8] : memref<5x16x224xbf16, #tpu.memory_space<vmem>>, vector<1x16x224xbf16>
    %10 = vector.shape_cast %9 : vector<1x16x224xbf16> to vector<16x224xbf16>
    %cst_9 = arith.constant dense<0.000000e+00> : vector<16x128xf32>
    %11 = tpu.matmul %10, %0, %cst_9 {dimension_numbers = #tpu.dot_dimension_numbers<[1], [0], [0], [1], [0, 0, 1, 1], [], []>} : vector<16x224xbf16>, vector<224x128xbf16>, vector<16x128xf32> -> vector<16x128xf32>
    %12 = vector.broadcast %1 : vector<1x128xf32> to vector<16x128xf32>
    %13 = arith.addf %11, %12 : vector<16x128xf32>
    %cst_10 = arith.constant 0.000000e+00 : f32
    %14 = vector.broadcast %cst_10 : f32 to vector<16x128xf32>
    %15 = arith.maximumf %13, %14 : vector<16x128xf32>
    %16 = arith.maximumf %8, %15 : vector<16x128xf32>
    %c2 = arith.constant 2 : index
    %c0_11 = arith.constant 0 : index
    %c0_12 = arith.constant 0 : index
    %17 = vector.load %arg1[%c2, %c0_11, %c0_12] : memref<5x16x224xbf16, #tpu.memory_space<vmem>>, vector<1x16x224xbf16>
    %18 = vector.shape_cast %17 : vector<1x16x224xbf16> to vector<16x224xbf16>
    %cst_13 = arith.constant dense<0.000000e+00> : vector<16x128xf32>
    %19 = tpu.matmul %18, %0, %cst_13 {dimension_numbers = #tpu.dot_dimension_numbers<[1], [0], [0], [1], [0, 0, 1, 1], [], []>} : vector<16x224xbf16>, vector<224x128xbf16>, vector<16x128xf32> -> vector<16x128xf32>
    %20 = vector.broadcast %1 : vector<1x128xf32> to vector<16x128xf32>
    %21 = arith.addf %19, %20 : vector<16x128xf32>
    %cst_14 = arith.constant 0.000000e+00 : f32
    %22 = vector.broadcast %cst_14 : f32 to vector<16x128xf32>
    %23 = arith.maximumf %21, %22 : vector<16x128xf32>
    %24 = arith.maximumf %16, %23 : vector<16x128xf32>
    %c3 = arith.constant 3 : index
    %c0_15 = arith.constant 0 : index
    %c0_16 = arith.constant 0 : index
    %25 = vector.load %arg1[%c3, %c0_15, %c0_16] : memref<5x16x224xbf16, #tpu.memory_space<vmem>>, vector<1x16x224xbf16>
    %26 = vector.shape_cast %25 : vector<1x16x224xbf16> to vector<16x224xbf16>
    %cst_17 = arith.constant dense<0.000000e+00> : vector<16x128xf32>
    %27 = tpu.matmul %26, %0, %cst_17 {dimension_numbers = #tpu.dot_dimension_numbers<[1], [0], [0], [1], [0, 0, 1, 1], [], []>} : vector<16x224xbf16>, vector<224x128xbf16>, vector<16x128xf32> -> vector<16x128xf32>
    %28 = vector.broadcast %1 : vector<1x128xf32> to vector<16x128xf32>
    %29 = arith.addf %27, %28 : vector<16x128xf32>
    %cst_18 = arith.constant 0.000000e+00 : f32
    %30 = vector.broadcast %cst_18 : f32 to vector<16x128xf32>
    %31 = arith.maximumf %29, %30 : vector<16x128xf32>
    %32 = arith.maximumf %24, %31 : vector<16x128xf32>
    %c4 = arith.constant 4 : index
    %c0_19 = arith.constant 0 : index
    %c0_20 = arith.constant 0 : index
    %33 = vector.load %arg1[%c4, %c0_19, %c0_20] : memref<5x16x224xbf16, #tpu.memory_space<vmem>>, vector<1x16x224xbf16>
    %34 = vector.shape_cast %33 : vector<1x16x224xbf16> to vector<16x224xbf16>
    %cst_21 = arith.constant dense<0.000000e+00> : vector<16x128xf32>
    %35 = tpu.matmul %34, %0, %cst_21 {dimension_numbers = #tpu.dot_dimension_numbers<[1], [0], [0], [1], [0, 0, 1, 1], [], []>} : vector<16x224xbf16>, vector<224x128xbf16>, vector<16x128xf32> -> vector<16x128xf32>
    %36 = vector.broadcast %1 : vector<1x128xf32> to vector<16x128xf32>
    %37 = arith.addf %35, %36 : vector<16x128xf32>
    %cst_22 = arith.constant 0.000000e+00 : f32
    %38 = vector.broadcast %cst_22 : f32 to vector<16x128xf32>
    %39 = arith.maximumf %37, %38 : vector<16x128xf32>
    %40 = arith.maximumf %32, %39 : vector<16x128xf32>
    %41 = arith.truncf %40 : vector<16x128xf32> to vector<16x128xbf16>
    %c0_23 = arith.constant 0 : index
    %c0_24 = arith.constant 0 : index
    %42 = vector.load %arg4[%c0_23, %c0_24] : memref<128x256xbf16, #tpu.memory_space<vmem>>, vector<128x256xbf16>
    %cst_25 = arith.constant dense<0.000000e+00> : vector<16x256xf32>
    %43 = tpu.matmul %41, %42, %cst_25 {dimension_numbers = #tpu.dot_dimension_numbers<[1], [0], [0], [1], [0, 0, 1, 1], [], []>} : vector<16x128xbf16>, vector<128x256xbf16>, vector<16x256xf32> -> vector<16x256xf32>
    %c0_26 = arith.constant 0 : index
    %c0_27 = arith.constant 0 : index
    %44 = vector.load %arg5[%c0_26, %c0_27] : memref<1x256xf32, #tpu.memory_space<vmem>>, vector<1x256xf32>
    %45 = vector.broadcast %44 : vector<1x256xf32> to vector<16x256xf32>
    %46 = arith.addf %43, %45 : vector<16x256xf32>
    %47 = vector.extract_strided_slice %46 {offsets = [0, 0], sizes = [16, 128], strides = [1, 1]} : vector<16x256xf32> to vector<16x128xf32>
    %cst_28 = arith.constant 0.000000e+00 : f32
    %48 = vector.broadcast %cst_28 : f32 to vector<16x128xf32>
    %49 = arith.maximumf %47, %48 : vector<16x128xf32>
    %50 = vector.extract_strided_slice %46 {offsets = [0, 128], sizes = [16, 128], strides = [1, 1]} : vector<16x256xf32> to vector<16x128xf32>
    %51 = arith.negf %50 : vector<16x128xf32>
    %52 = math.exp %51 : vector<16x128xf32>
    %cst_29 = arith.constant 1.000000e+00 : f32
    %53 = vector.broadcast %cst_29 : f32 to vector<16x128xf32>
    %54 = arith.addf %53, %52 : vector<16x128xf32>
    %55 = arith.divf %53, %54 : vector<16x128xf32>
    %56 = arith.mulf %55, %49 : vector<16x128xf32>
    %cst_30 = arith.constant 1.000000e+00 : f32
    %57 = vector.broadcast %cst_30 : f32 to vector<16x128xf32>
    %58 = arith.subf %57, %55 : vector<16x128xf32>
    %59 = arith.mulf %58, %40 : vector<16x128xf32>
    %60 = arith.addf %56, %59 : vector<16x128xf32>
    %61 = arith.truncf %60 : vector<16x128xf32> to vector<16x128xbf16>
    %c0_31 = arith.constant 0 : index
    %c0_32 = arith.constant 0 : index
    %62 = vector.load %arg6[%c0_31, %c0_32] : memref<128x256xbf16, #tpu.memory_space<vmem>>, vector<128x256xbf16>
    %cst_33 = arith.constant dense<0.000000e+00> : vector<16x256xf32>
    %63 = tpu.matmul %61, %62, %cst_33 {dimension_numbers = #tpu.dot_dimension_numbers<[1], [0], [0], [1], [0, 0, 1, 1], [], []>} : vector<16x128xbf16>, vector<128x256xbf16>, vector<16x256xf32> -> vector<16x256xf32>
    %c0_34 = arith.constant 0 : index
    %c0_35 = arith.constant 0 : index
    %64 = vector.load %arg7[%c0_34, %c0_35] : memref<1x256xf32, #tpu.memory_space<vmem>>, vector<1x256xf32>
    %65 = vector.broadcast %64 : vector<1x256xf32> to vector<16x256xf32>
    %66 = arith.addf %63, %65 : vector<16x256xf32>
    %67 = vector.extract_strided_slice %66 {offsets = [0, 0], sizes = [16, 128], strides = [1, 1]} : vector<16x256xf32> to vector<16x128xf32>
    %cst_36 = arith.constant 0.000000e+00 : f32
    %68 = vector.broadcast %cst_36 : f32 to vector<16x128xf32>
    %69 = arith.maximumf %67, %68 : vector<16x128xf32>
    %70 = vector.extract_strided_slice %66 {offsets = [0, 128], sizes = [16, 128], strides = [1, 1]} : vector<16x256xf32> to vector<16x128xf32>
    %71 = arith.negf %70 : vector<16x128xf32>
    %72 = math.exp %71 : vector<16x128xf32>
    %cst_37 = arith.constant 1.000000e+00 : f32
    %73 = vector.broadcast %cst_37 : f32 to vector<16x128xf32>
    %74 = arith.addf %73, %72 : vector<16x128xf32>
    %75 = arith.divf %73, %74 : vector<16x128xf32>
    %76 = arith.mulf %75, %69 : vector<16x128xf32>
    %cst_38 = arith.constant 1.000000e+00 : f32
    %77 = vector.broadcast %cst_38 : f32 to vector<16x128xf32>
    %78 = arith.subf %77, %75 : vector<16x128xf32>
    %79 = arith.mulf %78, %60 : vector<16x128xf32>
    %80 = arith.addf %76, %79 : vector<16x128xf32>
    %cst_39 = arith.constant 0.000000e+00 : f32
    %81 = vector.broadcast %cst_39 : f32 to vector<16x128xf32>
    %82 = arith.maximumf %80, %81 : vector<16x128xf32>
    %cst_40 = arith.constant dense<0.000000e+00> : vector<16xf32>
    %83 = vector.multi_reduction <add>, %82, %cst_40 [1] : vector<16x128xf32> to vector<16xf32>
    %84 = vector.shape_cast %83 : vector<16xf32> to vector<16x1xf32>
    %cst_41 = arith.constant 1.280000e+02 : f32
    %85 = vector.broadcast %cst_41 : f32 to vector<16x1xf32>
    %86 = arith.divf %84, %85 : vector<16x1xf32>
    %87 = vector.broadcast %86 : vector<16x1xf32> to vector<16x128xf32>
    %88 = arith.subf %82, %87 : vector<16x128xf32>
    %89 = arith.mulf %88, %88 : vector<16x128xf32>
    %cst_42 = arith.constant dense<0.000000e+00> : vector<16xf32>
    %90 = vector.multi_reduction <add>, %89, %cst_42 [1] : vector<16x128xf32> to vector<16xf32>
    %91 = vector.shape_cast %90 : vector<16xf32> to vector<16x1xf32>
    %cst_43 = arith.constant 1.280000e+02 : f32
    %92 = vector.broadcast %cst_43 : f32 to vector<16x1xf32>
    %93 = arith.divf %91, %92 : vector<16x1xf32>
    %94 = vector.broadcast %86 : vector<16x1xf32> to vector<16x128xf32>
    %95 = arith.subf %82, %94 : vector<16x128xf32>
    %cst_44 = arith.constant 9.99999974E-6 : f32
    %96 = vector.broadcast %cst_44 : f32 to vector<16x1xf32>
    %97 = arith.addf %93, %96 : vector<16x1xf32>
    %98 = math.rsqrt %97 : vector<16x1xf32>
    %99 = vector.broadcast %98 : vector<16x1xf32> to vector<16x128xf32>
    %100 = arith.mulf %95, %99 : vector<16x128xf32>
    %c0_45 = arith.constant 0 : index
    %c0_46 = arith.constant 0 : index
    %101 = vector.load %arg8[%c0_45, %c0_46] : memref<1x128xf32, #tpu.memory_space<vmem>>, vector<1x128xf32>
    %102 = vector.broadcast %101 : vector<1x128xf32> to vector<16x128xf32>
    %103 = arith.mulf %100, %102 : vector<16x128xf32>
    %c0_47 = arith.constant 0 : index
    %c0_48 = arith.constant 0 : index
    %104 = vector.load %arg9[%c0_47, %c0_48] : memref<1x128xf32, #tpu.memory_space<vmem>>, vector<1x128xf32>
    %105 = vector.broadcast %104 : vector<1x128xf32> to vector<16x128xf32>
    %106 = arith.addf %103, %105 : vector<16x128xf32>
    %107 = arith.truncf %106 : vector<16x128xf32> to vector<16x128xbf16>
    %c0_49 = arith.constant 0 : index
    %c0_50 = arith.constant 0 : index
    %108 = vector.load %arg10[%c0_49, %c0_50] : memref<128x256xbf16, #tpu.memory_space<vmem>>, vector<128x256xbf16>
    %cst_51 = arith.constant dense<0.000000e+00> : vector<16x256xf32>
    %109 = tpu.matmul %107, %108, %cst_51 {dimension_numbers = #tpu.dot_dimension_numbers<[1], [0], [0], [1], [0, 0, 1, 1], [], []>} : vector<16x128xbf16>, vector<128x256xbf16>, vector<16x256xf32> -> vector<16x256xf32>
    %c0_52 = arith.constant 0 : index
    %c0_53 = arith.constant 0 : index
    %110 = vector.load %arg11[%c0_52, %c0_53] : memref<1x256xf32, #tpu.memory_space<vmem>>, vector<1x256xf32>
    %111 = vector.broadcast %110 : vector<1x256xf32> to vector<16x256xf32>
    %112 = arith.addf %109, %111 : vector<16x256xf32>
    %cst_54 = arith.constant 0.000000e+00 : f32
    %113 = vector.broadcast %cst_54 : f32 to vector<16x256xf32>
    %114 = arith.maximumf %112, %113 : vector<16x256xf32>
    %115 = arith.truncf %114 : vector<16x256xf32> to vector<16x256xbf16>
    %c0_55 = arith.constant 0 : index
    %c0_56 = arith.constant 0 : index
    %116 = vector.load %arg12[%c0_55, %c0_56] : memref<256x128xbf16, #tpu.memory_space<vmem>>, vector<256x128xbf16>
    %cst_57 = arith.constant dense<0.000000e+00> : vector<16x128xf32>
    %117 = tpu.matmul %115, %116, %cst_57 {dimension_numbers = #tpu.dot_dimension_numbers<[1], [0], [0], [1], [0, 0, 1, 1], [], []>} : vector<16x256xbf16>, vector<256x128xbf16>, vector<16x128xf32> -> vector<16x128xf32>
    %c0_58 = arith.constant 0 : index
    %c0_59 = arith.constant 0 : index
    %118 = vector.load %arg13[%c0_58, %c0_59] : memref<1x128xf32, #tpu.memory_space<vmem>>, vector<1x128xf32>
    %119 = vector.broadcast %118 : vector<1x128xf32> to vector<16x128xf32>
    %120 = arith.addf %117, %119 : vector<16x128xf32>
    %121 = arith.addf %120, %106 : vector<16x128xf32>
    %cst_60 = arith.constant dense<0.000000e+00> : vector<16xf32>
    %122 = vector.multi_reduction <add>, %121, %cst_60 [1] : vector<16x128xf32> to vector<16xf32>
    %123 = vector.shape_cast %122 : vector<16xf32> to vector<16x1xf32>
    %cst_61 = arith.constant 1.280000e+02 : f32
    %124 = vector.broadcast %cst_61 : f32 to vector<16x1xf32>
    %125 = arith.divf %123, %124 : vector<16x1xf32>
    %126 = vector.broadcast %125 : vector<16x1xf32> to vector<16x128xf32>
    %127 = arith.subf %121, %126 : vector<16x128xf32>
    %128 = arith.mulf %127, %127 : vector<16x128xf32>
    %cst_62 = arith.constant dense<0.000000e+00> : vector<16xf32>
    %129 = vector.multi_reduction <add>, %128, %cst_62 [1] : vector<16x128xf32> to vector<16xf32>
    %130 = vector.shape_cast %129 : vector<16xf32> to vector<16x1xf32>
    %cst_63 = arith.constant 1.280000e+02 : f32
    %131 = vector.broadcast %cst_63 : f32 to vector<16x1xf32>
    %132 = arith.divf %130, %131 : vector<16x1xf32>
    %133 = vector.broadcast %125 : vector<16x1xf32> to vector<16x128xf32>
    %134 = arith.subf %121, %133 : vector<16x128xf32>
    %cst_64 = arith.constant 9.99999974E-6 : f32
    %135 = vector.broadcast %cst_64 : f32 to vector<16x1xf32>
    %136 = arith.addf %132, %135 : vector<16x1xf32>
    %137 = math.rsqrt %136 : vector<16x1xf32>
    %138 = vector.broadcast %137 : vector<16x1xf32> to vector<16x128xf32>
    %139 = arith.mulf %134, %138 : vector<16x128xf32>
    %c0_65 = arith.constant 0 : index
    %c0_66 = arith.constant 0 : index
    %140 = vector.load %arg14[%c0_65, %c0_66] : memref<1x128xf32, #tpu.memory_space<vmem>>, vector<1x128xf32>
    %141 = vector.broadcast %140 : vector<1x128xf32> to vector<16x128xf32>
    %142 = arith.mulf %139, %141 : vector<16x128xf32>
    %c0_67 = arith.constant 0 : index
    %c0_68 = arith.constant 0 : index
    %143 = vector.load %arg15[%c0_67, %c0_68] : memref<1x128xf32, #tpu.memory_space<vmem>>, vector<1x128xf32>
    %144 = vector.broadcast %143 : vector<1x128xf32> to vector<16x128xf32>
    %145 = arith.addf %142, %144 : vector<16x128xf32>
    %146 = arith.truncf %145 : vector<16x128xf32> to vector<16x128xbf16>
    %c0_69 = arith.constant 0 : index
    %c0_70 = arith.constant 0 : index
    %147 = vector.load %arg16[%c0_69, %c0_70] : memref<128x256xbf16, #tpu.memory_space<vmem>>, vector<128x256xbf16>
    %cst_71 = arith.constant dense<0.000000e+00> : vector<16x256xf32>
    %148 = tpu.matmul %146, %147, %cst_71 {dimension_numbers = #tpu.dot_dimension_numbers<[1], [0], [0], [1], [0, 0, 1, 1], [], []>} : vector<16x128xbf16>, vector<128x256xbf16>, vector<16x256xf32> -> vector<16x256xf32>
    %c0_72 = arith.constant 0 : index
    %c0_73 = arith.constant 0 : index
    %149 = vector.load %arg17[%c0_72, %c0_73] : memref<1x256xf32, #tpu.memory_space<vmem>>, vector<1x256xf32>
    %150 = vector.broadcast %149 : vector<1x256xf32> to vector<16x256xf32>
    %151 = arith.addf %148, %150 : vector<16x256xf32>
    %cst_74 = arith.constant 0.000000e+00 : f32
    %152 = vector.broadcast %cst_74 : f32 to vector<16x256xf32>
    %153 = arith.maximumf %151, %152 : vector<16x256xf32>
    %154 = arith.truncf %153 : vector<16x256xf32> to vector<16x256xbf16>
    %c0_75 = arith.constant 0 : index
    %c0_76 = arith.constant 0 : index
    %155 = vector.load %arg18[%c0_75, %c0_76] : memref<256x128xbf16, #tpu.memory_space<vmem>>, vector<256x128xbf16>
    %cst_77 = arith.constant dense<0.000000e+00> : vector<16x128xf32>
    %156 = tpu.matmul %154, %155, %cst_77 {dimension_numbers = #tpu.dot_dimension_numbers<[1], [0], [0], [1], [0, 0, 1, 1], [], []>} : vector<16x256xbf16>, vector<256x128xbf16>, vector<16x128xf32> -> vector<16x128xf32>
    %c0_78 = arith.constant 0 : index
    %c0_79 = arith.constant 0 : index
    %157 = vector.load %arg19[%c0_78, %c0_79] : memref<1x128xf32, #tpu.memory_space<vmem>>, vector<1x128xf32>
    %158 = vector.broadcast %157 : vector<1x128xf32> to vector<16x128xf32>
    %159 = arith.addf %156, %158 : vector<16x128xf32>
    %160 = arith.addf %159, %145 : vector<16x128xf32>
    %cst_80 = arith.constant dense<0.000000e+00> : vector<16xf32>
    %161 = vector.multi_reduction <add>, %160, %cst_80 [1] : vector<16x128xf32> to vector<16xf32>
    %162 = vector.shape_cast %161 : vector<16xf32> to vector<16x1xf32>
    %cst_81 = arith.constant 1.280000e+02 : f32
    %163 = vector.broadcast %cst_81 : f32 to vector<16x1xf32>
    %164 = arith.divf %162, %163 : vector<16x1xf32>
    %165 = vector.broadcast %164 : vector<16x1xf32> to vector<16x128xf32>
    %166 = arith.subf %160, %165 : vector<16x128xf32>
    %167 = arith.mulf %166, %166 : vector<16x128xf32>
    %cst_82 = arith.constant dense<0.000000e+00> : vector<16xf32>
    %168 = vector.multi_reduction <add>, %167, %cst_82 [1] : vector<16x128xf32> to vector<16xf32>
    %169 = vector.shape_cast %168 : vector<16xf32> to vector<16x1xf32>
    %cst_83 = arith.constant 1.280000e+02 : f32
    %170 = vector.broadcast %cst_83 : f32 to vector<16x1xf32>
    %171 = arith.divf %169, %170 : vector<16x1xf32>
    %172 = vector.broadcast %164 : vector<16x1xf32> to vector<16x128xf32>
    %173 = arith.subf %160, %172 : vector<16x128xf32>
    %cst_84 = arith.constant 9.99999974E-6 : f32
    %174 = vector.broadcast %cst_84 : f32 to vector<16x1xf32>
    %175 = arith.addf %171, %174 : vector<16x1xf32>
    %176 = math.rsqrt %175 : vector<16x1xf32>
    %177 = vector.broadcast %176 : vector<16x1xf32> to vector<16x128xf32>
    %178 = arith.mulf %173, %177 : vector<16x128xf32>
    %c0_85 = arith.constant 0 : index
    %c0_86 = arith.constant 0 : index
    %179 = vector.load %arg20[%c0_85, %c0_86] : memref<1x128xf32, #tpu.memory_space<vmem>>, vector<1x128xf32>
    %180 = vector.broadcast %179 : vector<1x128xf32> to vector<16x128xf32>
    %181 = arith.mulf %178, %180 : vector<16x128xf32>
    %c0_87 = arith.constant 0 : index
    %c0_88 = arith.constant 0 : index
    %182 = vector.load %arg21[%c0_87, %c0_88] : memref<1x128xf32, #tpu.memory_space<vmem>>, vector<1x128xf32>
    %183 = vector.broadcast %182 : vector<1x128xf32> to vector<16x128xf32>
    %184 = arith.addf %181, %183 : vector<16x128xf32>
    %c0_89 = arith.constant 0 : index
    %c0_90 = arith.constant 0 : index
    %185 = vector.load %arg22[%c0_89, %c0_90] : memref<16x128xf32, #tpu.memory_space<vmem>>, vector<16x128xf32>
    tpu.vector_store %arg22[%c0_89, %c0_90], %184 {strides = array<i32>} : memref<16x128xf32, #tpu.memory_space<vmem>>, vector<16x128xf32>,
    return
  }
  func.func @transform_0(%arg0: i32) -> (i32, i32, i32) {
    %c0_i32 = arith.constant 0 : i32
    %c0_i32_0 = arith.constant 0 : i32
    %c0_i32_1 = arith.constant 0 : i32
    return %c0_i32, %arg0, %c0_i32_0 : i32, i32, i32
  }
  func.func @transform_1(%arg0: i32) -> (i32, i32) {
    %c0_i32 = arith.constant 0 : i32
    %c0_i32_0 = arith.constant 0 : i32
    %c0_i32_1 = arith.constant 0 : i32
    return %c0_i32, %c0_i32_0 : i32, i32
  }
  func.func @transform_2(%arg0: i32) -> (i32, i32) {
    %c0_i32 = arith.constant 0 : i32
    %c0_i32_0 = arith.constant 0 : i32
    %c0_i32_1 = arith.constant 0 : i32
    return %c0_i32, %c0_i32_0 : i32, i32
  }
  func.func @transform_3(%arg0: i32) -> (i32, i32) {
    %c0_i32 = arith.constant 0 : i32
    %c0_i32_0 = arith.constant 0 : i32
    %c0_i32_1 = arith.constant 0 : i32
    return %c0_i32, %c0_i32_0 : i32, i32
  }
  func.func @transform_4(%arg0: i32) -> (i32, i32) {
    %c0_i32 = arith.constant 0 : i32
    %c0_i32_0 = arith.constant 0 : i32
    %c0_i32_1 = arith.constant 0 : i32
    return %c0_i32, %c0_i32_0 : i32, i32
  }
  func.func @transform_5(%arg0: i32) -> (i32, i32) {
    %c0_i32 = arith.constant 0 : i32
    %c0_i32_0 = arith.constant 0 : i32
    %c0_i32_1 = arith.constant 0 : i32
    return %c0_i32, %c0_i32_0 : i32, i32
  }
  func.func @transform_6(%arg0: i32) -> (i32, i32) {
    %c0_i32 = arith.constant 0 : i32
    %c0_i32_0 = arith.constant 0 : i32
    %c0_i32_1 = arith.constant 0 : i32
    return %c0_i32, %c0_i32_0 : i32, i32
  }
  func.func @transform_7(%arg0: i32) -> (i32, i32) {
    %c0_i32 = arith.constant 0 : i32
    %c0_i32_0 = arith.constant 0 : i32
    %c0_i32_1 = arith.constant 0 : i32
    return %c0_i32, %c0_i32_0 : i32, i32
  }
  func.func @transform_8(%arg0: i32) -> (i32, i32) {
    %c0_i32 = arith.constant 0 : i32
    %c0_i32_0 = arith.constant 0 : i32
    %c0_i32_1 = arith.constant 0 : i32
    return %c0_i32, %c0_i32_0 : i32, i32
  }
  func.func @transform_9(%arg0: i32) -> (i32, i32) {
    %c0_i32 = arith.constant 0 : i32
    %c0_i32_0 = arith.constant 0 : i32
    %c0_i32_1 = arith.constant 0 : i32
    return %c0_i32, %c0_i32_0 : i32, i32
  }
  func.func @transform_10(%arg0: i32) -> (i32, i32) {
    %c0_i32 = arith.constant 0 : i32
    %c0_i32_0 = arith.constant 0 : i32
    %c0_i32_1 = arith.constant 0 : i32
    return %c0_i32, %c0_i32_0 : i32, i32
  }
  func.func @transform_11(%arg0: i32) -> (i32, i32) {
    %c0_i32 = arith.constant 0 : i32
    %c0_i32_0 = arith.constant 0 : i32
    %c0_i32_1 = arith.constant 0 : i32
    return %c0_i32, %c0_i32_0 : i32, i32
  }
  func.func @transform_12(%arg0: i32) -> (i32, i32) {
    %c0_i32 = arith.constant 0 : i32
    %c0_i32_0 = arith.constant 0 : i32
    %c0_i32_1 = arith.constant 0 : i32
    return %c0_i32, %c0_i32_0 : i32, i32
  }
  func.func @transform_13(%arg0: i32) -> (i32, i32) {
    %c0_i32 = arith.constant 0 : i32
    %c0_i32_0 = arith.constant 0 : i32
    %c0_i32_1 = arith.constant 0 : i32
    return %c0_i32, %c0_i32_0 : i32, i32
  }
  func.func @transform_14(%arg0: i32) -> (i32, i32) {
    %c0_i32 = arith.constant 0 : i32
    %c0_i32_0 = arith.constant 0 : i32
    %c0_i32_1 = arith.constant 0 : i32
    return %c0_i32, %c0_i32_0 : i32, i32
  }
  func.func @transform_15(%arg0: i32) -> (i32, i32) {
    %c0_i32 = arith.constant 0 : i32
    %c0_i32_0 = arith.constant 0 : i32
    %c0_i32_1 = arith.constant 0 : i32
    return %c0_i32, %c0_i32_0 : i32, i32
  }
  func.func @transform_16(%arg0: i32) -> (i32, i32) {
    %c0_i32 = arith.constant 0 : i32
    %c0_i32_0 = arith.constant 0 : i32
    %c0_i32_1 = arith.constant 0 : i32
    return %c0_i32, %c0_i32_0 : i32, i32
  }
  func.func @transform_17(%arg0: i32) -> (i32, i32) {
    %c0_i32 = arith.constant 0 : i32
    %c0_i32_0 = arith.constant 0 : i32
    %c0_i32_1 = arith.constant 0 : i32
    return %c0_i32, %c0_i32_0 : i32, i32
  }
  func.func @transform_18(%arg0: i32) -> (i32, i32) {
    %c0_i32 = arith.constant 0 : i32
    %c0_i32_0 = arith.constant 0 : i32
    %c0_i32_1 = arith.constant 0 : i32
    return %c0_i32, %c0_i32_0 : i32, i32
  }
  func.func @transform_19(%arg0: i32) -> (i32, i32) {
    %c0_i32 = arith.constant 0 : i32
    %c0_i32_0 = arith.constant 0 : i32
    %c0_i32_1 = arith.constant 0 : i32
    return %c0_i32, %c0_i32_0 : i32, i32
  }
  func.func @transform_20(%arg0: i32) -> (i32, i32) {
    %c0_i32 = arith.constant 0 : i32
    %c0_i32_0 = arith.constant 0 : i32
    %c0_i32_1 = arith.constant 0 : i32
    return %c0_i32, %c0_i32_0 : i32, i32
  }
  func.func @transform_21(%arg0: i32) -> (i32, i32) {
    %c0_i32 = arith.constant 0 : i32
    %c0_i32_0 = arith.constant 0 : i32
    return %arg0, %c0_i32 : i32, i32
  }
}

</mosaic_0001>

<bundles_post_ra>
// kernel: char_to_pseudo_word.1
= control target key start
LH: loop header
LB: loop body
LE: loop exit
PB: predicated region body
PF: predicated region fallthrough
CT: control target
= control target key end

     0   :  { %s2782_s0 = inlined_call_operand.vmem [shape: bf16[5,16,224], index: 0, kind: input, shape index: {}]   ;;  %s2783_s1 = inlined_call_operand.vmem [shape: bf16[224,128], index: 1, kind: input, shape index: {}]   ;;  %s2784_s2 = inlined_call_operand.vmem [shape: f32[1,128], index: 2, kind: input, shape index: {}]   ;;  %s2785_s3 = inlined_call_operand.vmem [shape: bf16[128,256], index: 3, kind: input, shape index: {}]   ;;  %s2786_s4 = inlined_call_operand.vmem [shape: f32[1,256], index: 4, kind: input, shape index: {}]   ;;  %s2787_s5 = inlined_call_operand.vmem [shape: bf16[128,256], index: 5, kind: input, shape index: {}]   ;;  %s2788_s6 = inlined_call_operand.vmem [shape: f32[1,256], index: 6, kind: input, shape index: {}]   ;;  %s2789_s7 = inlined_call_operand.vmem [shape: f32[1,128], index: 7, kind: input, shape index: {}]   ;;  %s2790_s8 = inlined_call_operand.vmem [shape: f32[1,128], index: 8, kind: input, shape index: {}]   ;;  %s2791_s9 = inlined_call_operand.vmem [shape: bf16[128,256], index: 9, kind: input, shape index: {}]   ;;  %s2792_s10 = inlined_call_operand.vmem [shape: f32[1,256], index: 10, kind: input, shape index: {}]   ;;  %s2793_s11 = inlined_call_operand.vmem [shape: bf16[256,128], index: 11, kind: input, shape index: {}]   ;;  %s2794_s12 = inlined_call_operand.vmem [shape: f32[1,128], index: 12, kind: input, shape index: {}]   ;;  %s2795_s13 = inlined_call_operand.vmem [shape: f32[1,128], index: 13, kind: input, shape index: {}]   ;;  %s2796_s14 = inlined_call_operand.vmem [shape: f32[1,128], index: 14, kind: input, shape index: {}]   ;;  %s2797_s15 = inlined_call_operand.vmem [shape: bf16[128,256], index: 15, kind: input, shape index: {}]   ;;  %s2798_s16 = inlined_call_operand.vmem [shape: f32[1,256], index: 16, kind: input, shape index: {}]   ;;  %s2799_s17 = inlined_call_operand.vmem [shape: bf16[256,128], index: 17, kind: input, shape index: {}]   ;;  %s2800_s18 = inlined_call_operand.vmem [shape: f32[1,128], index: 18, kind: input, shape index: {}]   ;;  %s2801_s19 = inlined_call_operand.vmem [shape: f32[1,128], index: 19, kind: input, shape index: {}]   ;;  %s2802_s20 = inlined_call_operand.vmem [shape: f32[1,128], index: 20, kind: input, shape index: {}]   ;;  %s2803_s21 = inlined_call_operand.hbm [shape: f32[16,128], index: 21, kind: output, shape index: {}]  }
   0x1   :  { %2808 = sst [smem:[#allocation5_spill]] %s2782_s0 }
   0x2   :  { %2809 = sst [smem:[#allocation6_spill]] %s2783_s1 }
   0x3   :  { %2810 = sst [smem:[#allocation7_spill]] %s2784_s2 }
   0x4   :  { %2811 = sst [smem:[#allocation8_spill]] %s2785_s3 }
   0x5   :  { %2812 = sst [smem:[#allocation9_spill]] %s2786_s4 }
   0x6   :  { %2813 = sst [smem:[#allocation10_spill]] %s2787_s5 }
   0x7   :  { %s2814_s26 = sld [smem:[#allocation6_spill]]  ;;  %v2049_v1 = vmov 0   ;;  %vm200_vm0 = vcmask 785408  }
   0x8   :  { %204 = vmatprep.subr.bf16.mxu0 %v2049_v1  ;;  %262 = vmatprep.subr.bf16.mxu1 %v2049_v1  ;;  %s2815_s1 = sld [smem:[#allocation5_spill]] }
   0xd   :  { %v2166_v0 = vld [vmem:[%s2814_s26 + $0x38] sm:$0xff]   ;;  %v2175_v2 = vld [vmem:[%s2814_s26 + $0x30] sm:$0xff]   ;;  %v2184_v3 = vld [vmem:[%s2814_s26 + $0x28] sm:$0xff]  }
   0xe   :  { %205 = vmatpush1.bf16.msra.mxu0 %v2166_v0  ;;  %263 = vmatpush1.bf16.msra.mxu1 %v2166_v0  ;;  %v2193_v4 = vld [vmem:[%s2814_s26 + $0x20] sm:$0xff]   ;;  %v2202_v5 = vld [vmem:[%s2814_s26 + $0x18] sm:$0xff]   ;;  %v2218_v8 = vld [vmem:[%s2814_s26 + $0x10] sm:$0xff]  }
   0xf   :  { %206 = vmatprep.subr.bf16.mxu0 %v2049_v1  ;;  %264 = vmatprep.subr.bf16.mxu1 %v2049_v1  ;;  %v1858_v6 = vld [vmem:[%s2815_s1 + $0x4] ss:$8 sps:$4 sm:$0xff]   ;;  %v1861_v7 = vld [vmem:[%s2815_s1 + $0x14] ss:$8 sps:$4 sm:$0xff]   ;;  %v1856_v17 = vld [vmem:[%s2815_s1] ss:$8 sps:$4 sm:$0xff]  }
  0x10   :  { %1665 = vmatprep.mubr.msk.bf16.mxu0 %vm200_vm0, %v1858_v6  ;;  %v2225_v9 = vld [vmem:[%s2814_s26 + $0x8] sm:$0xff]   ;;  %1670 = vmatprep.mubr.msk.bf16.mxu1 %vm200_vm0, %v1861_v7  ;;  %v2235_v10 = vld [vmem:[%s2814_s26] sm:$0xff]   ;;  %v2264_v13 = vld [vmem:[%s2814_s26 + $0x58] sm:$0xff]  }
  0x11   :  { %v2244_v11 = vld [vmem:[%s2814_s26 + $0x68] sm:$0xff]   ;;  %v2253_v12 = vld [vmem:[%s2814_s26 + $0x60] sm:$0xff]   ;;  %v2271_v14 = vld [vmem:[%s2814_s26 + $0x50] sm:$0xff]  }
  0x12   :  { %207 = vmatpush1.bf16.msra.mxu0 %v2175_v2  ;;  %265 = vmatpush1.bf16.msra.mxu1 %v2175_v2  ;;  %v2280_v15 = vld [vmem:[%s2814_s26 + $0x48] sm:$0xff]   ;;  %v2289_v16 = vld [vmem:[%s2814_s26 + $0x40] sm:$0xff]   ;;  %v1859_v18 = vld [vmem:[%s2815_s1 + $0x10] ss:$8 sps:$4 sm:$0xff]  }
  0x13   :  { %208 = vmatprep.subr.bf16.mxu0 %v2049_v1  ;;  %266 = vmatprep.subr.bf16.mxu1 %v2049_v1  ;;  %v1862_v19 = vld [vmem:[%s2815_s1 + $0x24] ss:$8 sps:$4 sm:$0xff]   ;;  %v1865_v20 = vld [vmem:[%s2815_s1 + $0x34] ss:$8 sps:$4 sm:$0xff]  }
  0x16   :  { %209 = vmatpush1.bf16.msra.mxu0 %v2184_v3  ;;  %267 = vmatpush1.bf16.msra.mxu1 %v2184_v3 }
  0x17   :  { %210 = vmatprep.subr.bf16.mxu0 %v2049_v1  ;;  %268 = vmatprep.subr.bf16.mxu1 %v2049_v1 }
  0x1a   :  { %211 = vmatpush1.bf16.msra.mxu0 %v2193_v4  ;;  %269 = vmatpush1.bf16.msra.mxu1 %v2193_v4 }
  0x1b   :  { %212 = vmatprep.subr.bf16.mxu0 %v2049_v1  ;;  %270 = vmatprep.subr.bf16.mxu1 %v2049_v1 }
  0x1e   :  { %213 = vmatpush1.bf16.msra.mxu0 %v2202_v5  ;;  %271 = vmatpush1.bf16.msra.mxu1 %v2202_v5 }
  0x1f   :  { %214 = vmatprep.subr.bf16.mxu0 %v2049_v1  ;;  %272 = vmatprep.subr.bf16.mxu1 %v2049_v1 }
  0x22   :  { %215 = vmatpush1.bf16.msra.mxu0 %v2218_v8  ;;  %273 = vmatpush1.bf16.msra.mxu1 %v2218_v8 }
  0x23   :  { %216 = vmatprep.subr.bf16.mxu0 %v2049_v1  ;;  %274 = vmatprep.subr.bf16.mxu1 %v2049_v1 }
  0x26   :  { %217 = vmatpush1.bf16.msra.mxu0 %v2225_v9  ;;  %275 = vmatpush1.bf16.msra.mxu1 %v2225_v9 }
  0x27   :  { %218 = vmatprep.subr.bf16.mxu0 %v2049_v1  ;;  %276 = vmatprep.subr.bf16.mxu1 %v2049_v1 }
  0x2a   :  { %219 = vmatpush1.bf16.msra.mxu0 %v2235_v10  ;;  %277 = vmatpush1.bf16.msra.mxu1 %v2235_v10 }
  0x2b   :  { %224 = vmatprep.subr.bf16.mxu0 %v2049_v1  ;;  %282 = vmatprep.subr.bf16.mxu1 %v2049_v1 }
  0x2e   :  { %225 = vmatpush2.bf16.msra.mxu0 %v2244_v11  ;;  %283 = vmatpush2.bf16.msra.mxu1 %v2244_v11 }
  0x2f   :  { %226 = vmatprep.subr.bf16.mxu0 %v2049_v1  ;;  %284 = vmatprep.subr.bf16.mxu1 %v2049_v1 }
  0x32   :  { %227 = vmatpush2.bf16.msra.mxu0 %v2253_v12  ;;  %285 = vmatpush2.bf16.msra.mxu1 %v2253_v12 }
  0x33   :  { %228 = vmatprep.subr.bf16.mxu0 %v2049_v1  ;;  %286 = vmatprep.subr.bf16.mxu1 %v2049_v1 }
  0x36   :  { %229 = vmatpush2.bf16.msra.mxu0 %v2264_v13  ;;  %287 = vmatpush2.bf16.msra.mxu1 %v2264_v13 }
  0x37   :  { %230 = vmatprep.subr.bf16.mxu0 %v2049_v1  ;;  %288 = vmatprep.subr.bf16.mxu1 %v2049_v1 }
  0x3a   :  { %231 = vmatpush2.bf16.msra.mxu0 %v2271_v14  ;;  %289 = vmatpush2.bf16.msra.mxu1 %v2271_v14 }
  0x3b   :  { %232 = vmatprep.subr.bf16.mxu0 %v2049_v1  ;;  %290 = vmatprep.subr.bf16.mxu1 %v2049_v1 }
  0x3e   :  { %233 = vmatpush2.bf16.msra.mxu0 %v2280_v15  ;;  %291 = vmatpush2.bf16.msra.mxu1 %v2280_v15 }
  0x3f   :  { %234 = vmatprep.subr.bf16.mxu0 %v2049_v1  ;;  %292 = vmatprep.subr.bf16.mxu1 %v2049_v1 }
  0x42   :  { %235 = vmatpush2.bf16.msra.mxu0 %v2289_v16  ;;  %293 = vmatpush2.bf16.msra.mxu1 %v2289_v16 }
  0x43   :  { %322 = vmatprep.subr.bf16.mxu0 %v2049_v1  ;;  %382 = vmatprep.subr.bf16.mxu1 %v2049_v1 }
  0x45   :  { %237 = vmatmul.mubr.bf16.vlgmr.msra.gmra.mxu0 %v1856_v17  ;;  %295 = vmatmul.mubr.bf16.vlgmr.msra.gmra.mxu1 %v1859_v18 }
  0x46   :  { %323 = vmatpush1.bf16.msra.mxu0 %v2166_v0  ;;  %383 = vmatpush1.bf16.msra.mxu1 %v2166_v0 }
  0x47   :  { %324 = vmatprep.subr.bf16.mxu0 %v2049_v1  ;;  %384 = vmatprep.subr.bf16.mxu1 %v2049_v1 }
  0x48   :  { %1675 = vmatprep.mubr.msk.bf16.mxu0 %vm200_vm0, %v1862_v19  ;;  %1680 = vmatprep.mubr.msk.bf16.mxu1 %vm200_vm0, %v1865_v20 }
  0x4a   :  { %325 = vmatpush1.bf16.msra.mxu0 %v2175_v2  ;;  %385 = vmatpush1.bf16.msra.mxu1 %v2175_v2 }
  0x4b   :  { %326 = vmatprep.subr.bf16.mxu0 %v2049_v1  ;;  %386 = vmatprep.subr.bf16.mxu1 %v2049_v1 }
  0x4c   :  { %26 = vsyncpa [#allocation3], 0  ;;  %v1864_v21 = vld [vmem:[%s2815_s1 + $0x20] ss:$8 sps:$4 sm:$0xff]   ;;  %v1867_v22 = vld [vmem:[%s2815_s1 + $0x30] ss:$8 sps:$4 sm:$0xff]  }
  0x4d   :  { %v1868_v23 = vld [vmem:[%s2815_s1 + $0x44] ss:$8 sps:$4 sm:$0xff]   ;;  %v1870_v24 = vld [vmem:[%s2815_s1 + $0x40] ss:$8 sps:$4 sm:$0xff]   ;;  %s2816_s26 = sld [smem:[#allocation8_spill]]  ;;  %s2050_s2 = smov [#allocation2]  }
  0x4e   :  { %327 = vmatpush1.bf16.msra.mxu0 %v2184_v3  ;;  %387 = vmatpush1.bf16.msra.mxu1 %v2184_v3  ;;  %s2817_s1 = sld [smem:[#allocation7_spill]] }
  0x4f   :  { %328 = vmatprep.subr.bf16.mxu0 %v2049_v1  ;;  %388 = vmatprep.subr.bf16.mxu1 %v2049_v1  ;;  %s2818_s27 = sld [smem:[#allocation10_spill]] }
  0x50   :  { %s2819_s4 = sld [smem:[#allocation9_spill]] }
  0x52   :  { %329 = vmatpush1.bf16.msra.mxu0 %v2193_v4  ;;  %389 = vmatpush1.bf16.msra.mxu1 %v2193_v4 }
  0x53   :  { %330 = vmatprep.subr.bf16.mxu0 %v2049_v1  ;;  %390 = vmatprep.subr.bf16.mxu1 %v2049_v1  ;;  %v1871_v25 = vld [vmem:[%s2816_s26 + $0x70] ss:$8 sps:$4 sm:$0xff]   ;;  %v1873_v26 = vld [vmem:[%s2816_s26 + $0x74] ss:$8 sps:$4 sm:$0xff]   ;;  %v1876_v27 = vld [vmem:[%s2816_s26 + $0x64] ss:$8 sps:$4 sm:$0xff]  }
  0x54   :  { %v1874_v28 = vld [vmem:[%s2816_s26 + $0x60] ss:$8 sps:$4 sm:$0xff]   ;;  %v1879_v29 = vld [vmem:[%s2816_s26 + $0x54] ss:$8 sps:$4 sm:$0xff]   ;;  %v1877_v30 = vld [vmem:[%s2816_s26 + $0x50] ss:$8 sps:$4 sm:$0xff]  }
  0x55   :  { %v1882_v31 = vld [vmem:[%s2816_s26 + $0x44] ss:$8 sps:$4 sm:$0xff]   ;;  %v1880_v32 = vld [vmem:[%s2816_s26 + $0x40] ss:$8 sps:$4 sm:$0xff]   ;;  %v1885_v33 = vld [vmem:[%s2816_s26 + $0x34] ss:$8 sps:$4 sm:$0xff]  }
  0x56   :  { %331 = vmatpush1.bf16.msra.mxu0 %v2202_v5  ;;  %391 = vmatpush1.bf16.msra.mxu1 %v2202_v5  ;;  %v1883_v34 = vld [vmem:[%s2816_s26 + $0x30] ss:$8 sps:$4 sm:$0xff]   ;;  %v1888_v35 = vld [vmem:[%s2816_s26 + $0x24] ss:$8 sps:$4 sm:$0xff]   ;;  %v1886_v36 = vld [vmem:[%s2816_s26 + $0x20] ss:$8 sps:$4 sm:$0xff]  }
  0x57   :  { %332 = vmatprep.subr.bf16.mxu0 %v2049_v1  ;;  %392 = vmatprep.subr.bf16.mxu1 %v2049_v1  ;;  %v1891_v37 = vld [vmem:[%s2816_s26 + $0x14] ss:$8 sps:$4 sm:$0xff]   ;;  %v1889_v38 = vld [vmem:[%s2816_s26 + $0x10] ss:$8 sps:$4 sm:$0xff]   ;;  %v1894_v39 = vld [vmem:[%s2816_s26 + $0x4] ss:$8 sps:$4 sm:$0xff]  }
  0x58   :  { %v1892_v40 = vld [vmem:[%s2816_s26] ss:$8 sps:$4 sm:$0xff]  }
  0x59   :  { %v1648_v41 = vld [vmem:[%s2817_s1] ss:$0 sm:$0xff] }
  0x5a   :  { %333 = vmatpush1.bf16.msra.mxu0 %v2218_v8  ;;  %393 = vmatpush1.bf16.msra.mxu1 %v2218_v8 }
  0x5b   :  { %334 = vmatprep.subr.bf16.mxu0 %v2049_v1  ;;  %394 = vmatprep.subr.bf16.mxu1 %v2049_v1 }
  0x5e   :  { %335 = vmatpush1.bf16.msra.mxu0 %v2225_v9  ;;  %395 = vmatpush1.bf16.msra.mxu1 %v2225_v9 }
  0x5f   :  { %336 = vmatprep.subr.bf16.mxu0 %v2049_v1  ;;  %396 = vmatprep.subr.bf16.mxu1 %v2049_v1 }
  0x62   :  { %337 = vmatpush1.bf16.msra.mxu0 %v2235_v10  ;;  %397 = vmatpush1.bf16.msra.mxu1 %v2235_v10 }
  0x63   :  { %342 = vmatprep.subr.bf16.mxu0 %v2049_v1  ;;  %402 = vmatprep.subr.bf16.mxu1 %v2049_v1 }
  0x66   :  { %343 = vmatpush2.bf16.msra.mxu0 %v2244_v11  ;;  %403 = vmatpush2.bf16.msra.mxu1 %v2244_v11 }
  0x67   :  { %344 = vmatprep.subr.bf16.mxu0 %v2049_v1  ;;  %404 = vmatprep.subr.bf16.mxu1 %v2049_v1 }
  0x6a   :  { %345 = vmatpush2.bf16.msra.mxu0 %v2253_v12  ;;  %405 = vmatpush2.bf16.msra.mxu1 %v2253_v12 }
  0x6b   :  { %346 = vmatprep.subr.bf16.mxu0 %v2049_v1  ;;  %406 = vmatprep.subr.bf16.mxu1 %v2049_v1 }
  0x6e   :  { %347 = vmatpush2.bf16.msra.mxu0 %v2264_v13  ;;  %407 = vmatpush2.bf16.msra.mxu1 %v2264_v13 }
  0x6f   :  { %348 = vmatprep.subr.bf16.mxu0 %v2049_v1  ;;  %408 = vmatprep.subr.bf16.mxu1 %v2049_v1 }
  0x72   :  { %349 = vmatpush2.bf16.msra.mxu0 %v2271_v14  ;;  %409 = vmatpush2.bf16.msra.mxu1 %v2271_v14 }
  0x73   :  { %350 = vmatprep.subr.bf16.mxu0 %v2049_v1  ;;  %410 = vmatprep.subr.bf16.mxu1 %v2049_v1 }
  0x76   :  { %351 = vmatpush2.bf16.msra.mxu0 %v2280_v15  ;;  %411 = vmatpush2.bf16.msra.mxu1 %v2280_v15 }
  0x77   :  { %352 = vmatprep.subr.bf16.mxu0 %v2049_v1  ;;  %412 = vmatprep.subr.bf16.mxu1 %v2049_v1 }
  0x7a   :  { %353 = vmatpush2.bf16.msra.mxu0 %v2289_v16  ;;  %413 = vmatpush2.bf16.msra.mxu1 %v2289_v16 }
  0x7b   :  { %442 = vmatprep.subr.bf16.mxu0 %v2049_v1  ;;  %596 = vmatprep.subr.bf16.mxu1 %v1873_v26 }
  0x7d   :  { %355 = vmatmul.mubr.bf16.vlgmr.msra.gmra.mxu0 %v1864_v21  ;;  %415 = vmatmul.mubr.bf16.vlgmr.msra.gmra.mxu1 %v1867_v22 }
  0x7e   :  { %443 = vmatpush1.bf16.msra.mxu0 %v2166_v0  ;;  %1685 = vmatprep.mubr.msk.bf16.mxu0 %vm200_vm0, %v1868_v23 }
  0x7f   :  { %444 = vmatprep.subr.bf16.mxu0 %v2049_v1  ;;  %628 = vmatprep.mubr.bf16.mxu1 %v2049_v1 }
  0x80   :  { %597 = vmatpush1.bf16.msra.mxu1 %v1871_v25 }
  0x81   :  { %598 = vmatprep.subr.bf16.mxu1 %v1876_v27 }
  0x82   :  { %445 = vmatpush1.bf16.msra.mxu0 %v2175_v2 }
  0x83   :  { %446 = vmatprep.subr.bf16.mxu0 %v2049_v1 }
  0x84   :  { %599 = vmatpush1.bf16.msra.mxu1 %v1874_v28  ;;  %v1897_v28 = vld [vmem:[%s2818_s27 + $0x74] ss:$8 sps:$4 sm:$0xff]  }
  0x85   :  { %600 = vmatprep.subr.bf16.mxu1 %v1879_v29  ;;  %v1895_v29 = vld [vmem:[%s2818_s27 + $0x70] ss:$8 sps:$4 sm:$0xff]  }
  0x86   :  { %447 = vmatpush1.bf16.msra.mxu0 %v2184_v3 }
  0x87   :  { %448 = vmatprep.subr.bf16.mxu0 %v2049_v1 }
  0x88   :  { %601 = vmatpush1.bf16.msra.mxu1 %v1877_v30  ;;  %v1900_v30 = vld [vmem:[%s2818_s27 + $0x64] ss:$8 sps:$4 sm:$0xff]  }
  0x89   :  { %602 = vmatprep.subr.bf16.mxu1 %v1882_v31  ;;  %v1898_v31 = vld [vmem:[%s2818_s27 + $0x60] ss:$8 sps:$4 sm:$0xff]  }
  0x8a   :  { %449 = vmatpush1.bf16.msra.mxu0 %v2193_v4 }
  0x8b   :  { %450 = vmatprep.subr.bf16.mxu0 %v2049_v1 }
  0x8c   :  { %603 = vmatpush1.bf16.msra.mxu1 %v1880_v32  ;;  %v1903_v32 = vld [vmem:[%s2818_s27 + $0x54] ss:$8 sps:$4 sm:$0xff]  }
  0x8d   :  { %604 = vmatprep.subr.bf16.mxu1 %v1885_v33  ;;  %v1901_v33 = vld [vmem:[%s2818_s27 + $0x50] ss:$8 sps:$4 sm:$0xff]  }
  0x8e   :  { %451 = vmatpush1.bf16.msra.mxu0 %v2202_v5 }
  0x8f   :  { %452 = vmatprep.subr.bf16.mxu0 %v2049_v1 }
  0x90   :  { %605 = vmatpush1.bf16.msra.mxu1 %v1883_v34  ;;  %v1904_v34 = vld [vmem:[%s2818_s27 + $0x40] ss:$8 sps:$4 sm:$0xff]  }
  0x91   :  { %606 = vmatprep.subr.bf16.mxu1 %v1888_v35  ;;  %v1906_v35 = vld [vmem:[%s2818_s27 + $0x44] ss:$8 sps:$4 sm:$0xff]  }
  0x92   :  { %453 = vmatpush1.bf16.msra.mxu0 %v2218_v8 }
  0x93   :  { %454 = vmatprep.subr.bf16.mxu0 %v2049_v1 }
  0x94   :  { %607 = vmatpush1.bf16.msra.mxu1 %v1886_v36  ;;  %v1909_v36 = vld [vmem:[%s2818_s27 + $0x34] ss:$8 sps:$4 sm:$0xff]  }
  0x95   :  { %608 = vmatprep.subr.bf16.mxu1 %v1891_v37  ;;  %v1907_v37 = vld [vmem:[%s2818_s27 + $0x30] ss:$8 sps:$4 sm:$0xff]  }
  0x96   :  { %455 = vmatpush1.bf16.msra.mxu0 %v2225_v9 }
  0x97   :  { %456 = vmatprep.subr.bf16.mxu0 %v2049_v1 }
  0x98   :  { %609 = vmatpush1.bf16.msra.mxu1 %v1889_v38  ;;  %v1912_v38 = vld [vmem:[%s2818_s27 + $0x24] ss:$8 sps:$4 sm:$0xff]  }
  0x99   :  { %610 = vmatprep.subr.bf16.mxu1 %v1894_v39  ;;  %v1910_v39 = vld [vmem:[%s2818_s27 + $0x20] ss:$8 sps:$4 sm:$0xff]  }
  0x9a   :  { %457 = vmatpush1.bf16.msra.mxu0 %v2235_v10 }
  0x9b   :  { %462 = vmatprep.subr.bf16.mxu0 %v2049_v1 }
  0x9c   :  { %611 = vmatpush1.bf16.msra.mxu1 %v1892_v40  ;;  %v1915_v40 = vld [vmem:[%s2818_s27 + $0x14] ss:$8 sps:$4 sm:$0xff]  }
  0x9d   :  { %770 = vmatprep.subr.bf16.mxu1 %v1897_v28 }
  0x9e   :  { %463 = vmatpush2.bf16.msra.mxu0 %v2244_v11 }
  0x9f   :  { %464 = vmatprep.subr.bf16.mxu0 %v2049_v1 }
  0xa2   :  { %465 = vmatpush2.bf16.msra.mxu0 %v2253_v12 }
  0xa3   :  { %466 = vmatprep.subr.bf16.mxu0 %v2049_v1 }
  0xa6   :  { %467 = vmatpush2.bf16.msra.mxu0 %v2264_v13 }
  0xa7   :  { %468 = vmatprep.subr.bf16.mxu0 %v2049_v1 }
  0xaa   :  { %469 = vmatpush2.bf16.msra.mxu0 %v2271_v14 }
  0xab   :  { %470 = vmatprep.subr.bf16.mxu0 %v2049_v1 }
  0xae   :  { %471 = vmatpush2.bf16.msra.mxu0 %v2280_v15 }
  0xaf   :  { %472 = vmatprep.subr.bf16.mxu0 %v2049_v1 }
  0xb2   :  { %473 = vmatpush2.bf16.msra.mxu0 %v2289_v16 }
  0xb5   :  { %475 = vmatmul.mubr.bf16.vlgmr.msra.gmra.mxu0 %v1870_v24 }
  0xb6   :  { %1019 = vmatprep.mubr.bf16.mxu0 %v2049_v1 }
 0x105   :  { %v238_v42 = vpop.f32.mrf.mxu0  ;;  %v296_v43 = vpop.f32.mrf.mxu1 }
 0x106   :  { %v239_v44 = vadd.f32 %v1648_v41, %v238_v42  ;;  %v297_v45 = vadd.f32 %v1648_v41, %v296_v43  ;;  %v1918_v42 = vld [vmem:[%s2818_s27 + $0x4] ss:$8 sps:$4 sm:$0xff]   ;;  %v1916_v43 = vld [vmem:[%s2818_s27] ss:$8 sps:$4 sm:$0xff]  }
 0x107   :  { %v240_v46 = vpop.f32.mrf.mxu0  ;;  %v298_v47 = vpop.f32.mrf.mxu1 }
 0x108   :  { %v245_v48 = vmax.f32 %v239_v44, 0.0  ;;  %v303_v49 = vmax.f32 %v297_v45, 0.0  ;;  %v506_v44 = vlaneseq  ;;  %v504_v47 = vld [vmem:[%s2819_s4] sm:$0x3] }
 0x109   :  { %v241_v50 = vpop.f32.mrf.mxu0  ;;  %v299_v51 = vpop.f32.mrf.mxu1 }
 0x10a   :  { %v305_v52 = vmax.f32 %v245_v48, %v303_v49  ;;  %v242_v53 = vadd.f32 %v1648_v41, %v241_v50  ;;  %v300_v54 = vadd.f32 %v1648_v41, %v299_v51  ;;  %v507_v45 = vshrl.u32 %v506_v44, 7 }
 0x10b   :  { %v243_v55 = vpop.f32.mrf.mxu0  ;;  %v301_v56 = vpop.f32.mrf.mxu1 }
 0x10c   :  { %v246_v57 = vmax.f32 %v242_v53, 0.0  ;;  %v304_v58 = vmax.f32 %v300_v54, 0.0  ;;  %v2516_v46 = vsub.s32 1, %v507_v45 }
 0x10e   :  { %v306_v59 = vmax.f32 %v246_v57, %v304_v58  ;;  %v513_v48 = vrot.slane %v504_v47, %v2516_v46 }
 0x13d   :  { %v356_v60 = vpop.f32.mrf.mxu0  ;;  %v416_v61 = vpop.f32.mrf.mxu1 }
 0x13e   :  { %v357_v5 = vadd.f32 %v1648_v41, %v356_v60  ;;  %v417_v8 = vadd.f32 %v1648_v41, %v416_v61  ;;  %v2522_v61 = vsub.s32 0, %v507_v45 }
 0x13f   :  { %v358_v62 = vpop.f32.mrf.mxu0  ;;  %v418_v63 = vpop.f32.mrf.mxu1 }
 0x140   :  { %v363_v7 = vmax.f32 %v357_v5, 0.0  ;;  %v423_v15 = vmax.f32 %v417_v8, 0.0  ;;  %v509_v62 = vrot.slane %v504_v47, %v2522_v61  ;;  %v1919_v47 = vld [vmem:[%s2791_s9 + $0x70] ss:$8 sps:$4 sm:$0xff]  }
 0x141   :  { %v359_v0 = vpop.f32.mrf.mxu0  ;;  %v419_v2 = vpop.f32.mrf.mxu1 }
 0x142   :  { %v360_v6 = vadd.f32 %v1648_v41, %v359_v0  ;;  %v420_v10 = vadd.f32 %v1648_v41, %v419_v2  ;;  %v365_v14 = vmax.f32 %v305_v52, %v363_v7 }
 0x143   :  { %v361_v3 = vpop.f32.mrf.mxu0  ;;  %v421_v4 = vpop.f32.mrf.mxu1 }
 0x144   :  { %v364_v9 = vmax.f32 %v360_v6, 0.0  ;;  %v424_v17 = vmax.f32 %v420_v10, 0.0  ;;  %v425_v22 = vmax.f32 %v365_v14, %v423_v15  ;;  %v678_v15 = vld [vmem:[%s2788_s6] sm:$0x3] }
 0x146   :  { %v366_v16 = vmax.f32 %v306_v59, %v364_v9 }
 0x148   :  { %v426_v23 = vmax.f32 %v366_v16, %v424_v17  ;;  %v687_v16 = vrot.slane %v678_v15, %v2516_v46 }
 0x175   :  { %v476_v11 = vpop.f32.mrf.mxu0 }
 0x176   :  { %v477_v12 = vadd.f32 %v1648_v41, %v476_v11 }
 0x177   :  { %v478_v13 = vpop.f32.mrf.mxu0 }
 0x178   :  { %v483_v19 = vmax.f32 %v477_v12, 0.0 }
 0x179   :  { %v479_v18 = vpop.f32.mrf.mxu0 }
 0x17a   :  { %v480_v20 = vadd.f32 %v1648_v41, %v479_v18  ;;  %v2461_v25 = vmax.f32 %v425_v22, %v483_v19  ;;  %v1913_v41 = vld [vmem:[%s2818_s27 + $0x10] ss:$8 sps:$4 sm:$0xff]  }
 0x17b   :  { %v481_v21 = vpop.f32.mrf.mxu0 }
 0x17c   :  { %v484_v24 = vmax.f32 %v480_v20, 0.0 }
 0x17e   :  { %v2463_v26 = vmax.f32 %v426_v23, %v484_v24 }
 0x180   :  { %v487_v27 = vpack.c.bf16 %v2463_v26, %v2461_v25 }
 0x182   :  { %629 = vmatmul.mubr.bf16.vlgmr.msra.gmra.mxu1 %v487_v27 }
 0x183   :  { %802 = vmatprep.mubr.bf16.mxu1 %v2049_v1  ;;  %771 = vmatpush1.bf16.msra.mxu1 %v1895_v29  ;;  %v683_v29 = vrot.slane %v678_v15, %v2522_v61  ;;  %v1949_v15 = vld [vmem:[%s2793_s11 + $0x60] sm:$0xff]  }
 0x184   :  { %772 = vmatprep.subr.bf16.mxu1 %v1900_v30 }
 0x187   :  { %773 = vmatpush1.bf16.msra.mxu1 %v1898_v31 }
 0x188   :  { %774 = vmatprep.subr.bf16.mxu1 %v1903_v32 }
 0x18b   :  { %775 = vmatpush1.bf16.msra.mxu1 %v1901_v33 }
 0x18c   :  { %776 = vmatprep.subr.bf16.mxu1 %v1906_v35 }
 0x18f   :  { %777 = vmatpush1.bf16.msra.mxu1 %v1904_v34 }
 0x190   :  { %778 = vmatprep.subr.bf16.mxu1 %v1909_v36 }
 0x193   :  { %779 = vmatpush1.bf16.msra.mxu1 %v1907_v37 }
 0x194   :  { %780 = vmatprep.subr.bf16.mxu1 %v1912_v38 }
 0x197   :  { %781 = vmatpush1.bf16.msra.mxu1 %v1910_v39 }
 0x198   :  { %782 = vmatprep.subr.bf16.mxu1 %v1915_v40 }
 0x19b   :  { %783 = vmatpush1.bf16.msra.mxu1 %v1913_v41 }
 0x19c   :  { %784 = vmatprep.subr.bf16.mxu1 %v1918_v42 }
 0x19f   :  { %785 = vmatpush1.bf16.msra.mxu1 %v1916_v43 }
 0x242   :  { %v630_v49 = vpop.f32.mrf.mxu1 }
 0x243   :  { %v631_v0 = vadd.f32 %v630_v49, %v509_v62 }
 0x244   :  { %v632_v50 = vpop.f32.mrf.mxu1 }
 0x245   :  { %v633_v51 = vadd.f32 %v632_v50, %v513_v48  ;;  %v639_v5 = vmax.f32 %v631_v0, 0.0  ;;  %v1933_v0 = vld [vmem:[%s2791_s9 + $0x34] ss:$8 sps:$4 sm:$0xff]  }
 0x246   :  { %v634_v52 = vpop.f32.mrf.mxu1 }
 0x247   :  { %v1702_v53 = vmul.f32 -1.442695, %v633_v51  ;;  %v635_v2 = vadd.f32 %v634_v52, %v509_v62  ;;  %v1928_v62 = vld [vmem:[%s2791_s9 + $0x40] ss:$8 sps:$4 sm:$0xff]  }
 0x248   :  { %v636_v54 = vpop.f32.mrf.mxu1 }
 0x249   :  { %1999 = vpow2.f32 %v1702_v53  ;;  %v637_v55 = vadd.f32 %v636_v54, %v513_v48  ;;  %v640_v6 = vmax.f32 %v635_v2, 0.0  ;;  %v1921_v48 = vld [vmem:[%s2791_s9 + $0x74] ss:$8 sps:$4 sm:$0xff]   ;;  %v1931_v2 = vld [vmem:[%s2791_s9 + $0x30] ss:$8 sps:$4 sm:$0xff]  }
 0x24a   :  { %987 = vmatprep.subr.bf16.mxu0 %v1921_v48 }
 0x24b   :  { %v1703_v56 = vmul.f32 -1.442695, %v637_v55  ;;  %988 = vmatpush1.bf16.msra.mxu0 %v1919_v47 }
 0x24d   :  { %2001 = vpow2.f32 %v1703_v56 }
 0x256   :  { %v2000_v57 = vpop.eup %1999 }
 0x257   :  { %v647_v58 = vadd.f32 1.0, %v2000_v57  ;;  %v1924_v57 = vld [vmem:[%s2791_s9 + $0x64] ss:$8 sps:$4 sm:$0xff]  }
 0x258   :  { %989 = vmatprep.subr.bf16.mxu0 %v1924_v57 }
 0x259   :  { %2003 = vrcp.f32 %v647_v58  ;;  %v1922_v58 = vld [vmem:[%s2791_s9 + $0x60] ss:$8 sps:$4 sm:$0xff]  }
 0x25a   :  { %v2002_v59 = vpop.eup %2001  ;;  %990 = vmatpush1.bf16.msra.mxu0 %v1922_v58 }
 0x25b   :  { %v648_v60 = vadd.f32 1.0, %v2002_v59  ;;  %v1927_v59 = vld [vmem:[%s2791_s9 + $0x54] ss:$8 sps:$4 sm:$0xff]  }
 0x25c   :  { %991 = vmatprep.subr.bf16.mxu0 %v1927_v59 }
 0x25d   :  { %2005 = vrcp.f32 %v648_v60  ;;  %v1925_v60 = vld [vmem:[%s2791_s9 + $0x50] ss:$8 sps:$4 sm:$0xff]  }
 0x25e   :  { %992 = vmatpush1.bf16.msra.mxu0 %v1925_v60  ;;  %v1740_v60 = vld [vmem:[%s2794_s12] ss:$0 sm:$0xff]  ;;  %s1637_s12 = sshll.u32 %s2050_s2, 4  ;;  %s1638_s12 = int_to_ptr.vmem [resolvable:$true] %s1637_s12 }
 0x25f   :  { %s2027_s1 = scalar_lea.vmem %s1638_s12, 256  ;;  %p2032_p1 = scmp.lt.s32.totalorder %s1638_s12, %s1638_s12 }
 0x260   :  { %p2028_p0 = scmp.ne.s32.totalorder %s1638_s12, %s2027_s1  ;;  %p2033_p2 = scmp.lt.s32.totalorder %s2027_s1, %s2027_s1 }
 0x262   :  { %p2034_p3 = por %p2033_p2, %p2032_p1 }
 0x264   :  { %p2035_p4 = pnand %p2034_p3, %p2028_p0 }
 0x266   :  { %v2004_v63 = vpop.eup %2003 }
 0x267   :  { %v655_v3 = vsub.f32 1.0, %v2004_v63  ;;  %v653_v9 = vmul.f32 %v2004_v63, %v639_v5  ;;  %v1930_v63 = vld [vmem:[%s2791_s9 + $0x44] ss:$8 sps:$4 sm:$0xff]   ;;  %v1939_v5 = vld [vmem:[%s2791_s9 + $0x14] ss:$8 sps:$4 sm:$0xff]  }
 0x268   :  { %993 = vmatprep.subr.bf16.mxu0 %v1930_v63 }
 0x269   :  { %v657_v8 = vmul.f32 %v655_v3, %v2461_v25  ;;  %994 = vmatpush1.bf16.msra.mxu0 %v1928_v62  ;;  %v1936_v3 = vld [vmem:[%s2791_s9 + $0x24] ss:$8 sps:$4 sm:$0xff]  }
 0x26a   :  { %v2006_v4 = vpop.eup %2005  ;;  %995 = vmatprep.subr.bf16.mxu0 %v1933_v0 }
 0x26b   :  { %v656_v7 = vsub.f32 1.0, %v2006_v4  ;;  %v654_v10 = vmul.f32 %v2006_v4, %v640_v6  ;;  %v659_v12 = vadd.f32 %v657_v8, %v653_v9  ;;  %v1934_v4 = vld [vmem:[%s2791_s9 + $0x20] ss:$8 sps:$4 sm:$0xff]   ;;  %v1937_v6 = vld [vmem:[%s2791_s9 + $0x10] ss:$8 sps:$4 sm:$0xff]  }
 0x26c   :  { %v1940_v8 = vld [vmem:[%s2791_s9] ss:$8 sps:$4 sm:$0xff]   ;;  %v1943_v9 = vld [vmem:[%s2793_s11 + $0x78] sm:$0xff]  }
 0x26d   :  { %v658_v11 = vmul.f32 %v656_v7, %v2463_v26  ;;  %996 = vmatpush1.bf16.msra.mxu0 %v1931_v2  ;;  %v1942_v7 = vld [vmem:[%s2791_s9 + $0x4] ss:$8 sps:$4 sm:$0xff]   ;;  %1794 = vmatprep.subr.bf16.mxu1 %v1943_v9  ;;  %v1961_v9 = vld [vmem:[%s2797_s15 + $0x74] ss:$8 sps:$4 sm:$0xff]  }
 0x26e   :  { %997 = vmatprep.subr.bf16.mxu0 %v1936_v3 }
 0x26f   :  { %v660_v13 = vadd.f32 %v658_v11, %v654_v10  ;;  %v1944_v10 = vld [vmem:[%s2793_s11 + $0x38] sm:$0xff]   ;;  %v1945_v11 = vld [vmem:[%s2793_s11 + $0x70] sm:$0xff]  }
 0x271   :  { %v661_v14 = vpack.c.bf16 %v660_v13, %v659_v12  ;;  %998 = vmatpush1.bf16.msra.mxu0 %v1934_v4 }
 0x272   :  { %999 = vmatprep.subr.bf16.mxu0 %v1939_v5 }
 0x273   :  { %803 = vmatmul.mubr.bf16.vlgmr.msra.gmra.mxu1 %v661_v14  ;;  %v1948_v14 = vld [vmem:[%s2793_s11 + $0x28] sm:$0xff]  }
 0x274   :  { %1795 = vmatpush3.bf16.msra.mxu1 %v1944_v10 }
 0x275   :  { %1000 = vmatpush1.bf16.msra.mxu0 %v1937_v6  ;;  %1796 = vmatprep.subr.bf16.mxu1 %v1945_v11 }
 0x276   :  { %1001 = vmatprep.subr.bf16.mxu0 %v1942_v7 }
 0x279   :  { %1002 = vmatpush1.bf16.msra.mxu0 %v1940_v8  ;;  %v1959_v8 = vld [vmem:[%s2797_s15 + $0x70] ss:$8 sps:$4 sm:$0xff]  }
 0x27a   :  { %1363 = vmatprep.subr.bf16.mxu0 %v1961_v9 }
 0x333   :  { %v804_v17 = vpop.f32.mrf.mxu1 }
 0x334   :  { %v805_v30 = vadd.f32 %v804_v17, %v683_v29  ;;  %v1951_v17 = vld [vmem:[%s2793_s11 + $0x58] sm:$0xff]  }
 0x335   :  { %v806_v18 = vpop.f32.mrf.mxu1 }
 0x336   :  { %v807_v19 = vadd.f32 %v806_v18, %v687_v16  ;;  %v813_v32 = vmax.f32 %v805_v30, 0.0  ;;  %v1952_v18 = vld [vmem:[%s2793_s11 + $0x18] sm:$0xff]  }
 0x337   :  { %v808_v20 = vpop.f32.mrf.mxu1 }
 0x338   :  { %v1720_v21 = vmul.f32 -1.442695, %v807_v19  ;;  %v809_v33 = vadd.f32 %v808_v20, %v683_v29 }
 0x339   :  { %v810_v22 = vpop.f32.mrf.mxu1 }
 0x33a   :  { %2007 = vpow2.f32 %v1720_v21  ;;  %v811_v23 = vadd.f32 %v810_v22, %v687_v16  ;;  %v814_v38 = vmax.f32 %v809_v33, 0.0  ;;  %v1950_v16 = vld [vmem:[%s2793_s11 + $0x20] sm:$0xff]  }
 0x33c   :  { %v1721_v24 = vmul.f32 -1.442695, %v811_v23 }
 0x33e   :  { %2009 = vpow2.f32 %v1721_v24 }
 0x347   :  { %v2008_v25 = vpop.eup %2007 }
 0x348   :  { %v821_v26 = vadd.f32 1.0, %v2008_v25 }
 0x34a   :  { %2011 = vrcp.f32 %v821_v26 }
 0x34b   :  { %v2010_v27 = vpop.eup %2009 }
 0x34c   :  { %v822_v28 = vadd.f32 1.0, %v2010_v27  ;;  %v1722_v27 = vld [vmem:[%s2789_s7] ss:$0 sm:$0xff] }
 0x34e   :  { %2013 = vrcp.f32 %v822_v28 }
 0x357   :  { %v2012_v31 = vpop.eup %2011 }
 0x358   :  { %v829_v34 = vsub.f32 1.0, %v2012_v31  ;;  %v827_v35 = vmul.f32 %v2012_v31, %v813_v32  ;;  %v1723_v31 = vld [vmem:[%s2790_s8] ss:$0 sm:$0xff] }
 0x35a   :  { %v831_v36 = vmul.f32 %v829_v34, %v659_v12  ;;  %v1946_v12 = vld [vmem:[%s2793_s11 + $0x30] sm:$0xff]  }
 0x35b   :  { %v2014_v37 = vpop.eup %2013  ;;  %1797 = vmatpush3.bf16.msra.mxu1 %v1946_v12 }
 0x35c   :  { %v833_v39 = vadd.f32 %v831_v36, %v827_v35  ;;  %v830_v40 = vsub.f32 1.0, %v2014_v37  ;;  %v828_v42 = vmul.f32 %v2014_v37, %v814_v38  ;;  %v1953_v36 = vld [vmem:[%s2793_s11 + $0x50] sm:$0xff]   ;;  %v1955_v38 = vld [vmem:[%s2793_s11 + $0x48] sm:$0xff]  }
 0x35d   :  { %v1954_v37 = vld [vmem:[%s2793_s11 + $0x10] sm:$0xff]  }
 0x35e   :  { %v835_v41 = vmax.f32 %v833_v39, 0.0  ;;  %v832_v43 = vmul.f32 %v830_v40, %v660_v13  ;;  %v1947_v13 = vld [vmem:[%s2793_s11 + $0x68] sm:$0xff]   ;;  %v1958_v40 = vld [vmem:[%s2793_s11] sm:$0xff]  }
 0x35f   :  { %1798 = vmatprep.subr.bf16.mxu1 %v1947_v13  ;;  %v1956_v39 = vld [vmem:[%s2793_s11 + $0x8] sm:$0xff]  }
 0x360   :  { %837 = vadd.xlane.f32.xlu0 %v835_v41  ;;  %v834_v44 = vadd.f32 %v832_v43, %v828_v42  ;;  %1799 = vmatpush3.bf16.msra.mxu1 %v1948_v14 }
 0x361   :  { %1800 = vmatprep.subr.bf16.mxu1 %v1949_v15 }
 0x362   :  { %v836_v45 = vmax.f32 %v834_v44, 0.0 }
 0x364   :  { %839 = vadd.xlane.f32.xlu0 %v836_v45  ;;  %1801 = vmatpush3.bf16.msra.mxu1 %v1950_v16 }
 0x365   :  { %1802 = vmatprep.subr.bf16.mxu1 %v1951_v17 }
 0x368   :  { %1803 = vmatpush3.bf16.msra.mxu1 %v1952_v18  ;;  %v1964_v18 = vld [vmem:[%s2797_s15 + $0x64] ss:$8 sps:$4 sm:$0xff]  }
 0x369   :  { %1804 = vmatprep.subr.bf16.mxu1 %v1953_v36  ;;  %v1987_v36 = vld [vmem:[%s2799_s17 + $0x68] sm:$0xff]  }
 0x36c   :  { %1805 = vmatpush3.bf16.msra.mxu1 %v1954_v37  ;;  %v1988_v37 = vld [vmem:[%s2799_s17 + $0x28] sm:$0xff]  }
 0x36d   :  { %1806 = vmatprep.subr.bf16.mxu1 %v1955_v38  ;;  %v1989_v38 = vld [vmem:[%s2799_s17 + $0x60] sm:$0xff]  }
 0x370   :  { %1807 = vmatpush3.bf16.msra.mxu1 %v1956_v39  ;;  %v1990_v39 = vld [vmem:[%s2799_s17 + $0x20] sm:$0xff]  }
 0x3e9   :  { %v838_v49 = vpop.xlane.xlu0 %837 }
 0x3ea   :  { %v842_v50 = vmul.f32 0.0078125, %v838_v49 }
 0x3ec   :  { %v2538_v51 = vsub.f32 %v835_v41, %v842_v50  ;;  %v895_v41 = vld [vmem:[%s2792_s10] sm:$0x3] }
 0x3ed   :  { %v840_v52 = vpop.xlane.xlu0 %839  ;;  %v904_v43 = vrot.slane %v895_v41, %v2516_v46  ;;  %v900_v44 = vrot.slane %v895_v41, %v2522_v61 }
 0x3ee   :  { %v843_v53 = vmul.f32 0.0078125, %v840_v52  ;;  %v846_v54 = vmul.f32 %v2538_v51, %v2538_v51 }
 0x3f0   :  { %v2542_v55 = vsub.f32 %v836_v45, %v843_v53  ;;  %848 = vadd.xlane.f32.xlu1 %v846_v54 }
 0x3f2   :  { %v847_v56 = vmul.f32 %v2542_v55, %v2542_v55 }
 0x3f4   :  { %850 = vadd.xlane.f32.xlu1 %v847_v56 }
 0x479   :  { %v849_v19 = vpop.xlane.xlu1 %848 }
 0x47a   :  { %v852_v20 = vmul.f32 0.0078125, %v849_v19  ;;  %v1962_v19 = vld [vmem:[%s2797_s15 + $0x60] ss:$8 sps:$4 sm:$0xff]  }
 0x47c   :  { %v854_v21 = vadd.f32 1e-05, %v852_v20  ;;  %v1967_v20 = vld [vmem:[%s2797_s15 + $0x54] ss:$8 sps:$4 sm:$0xff]  }
 0x47d   :  { %v851_v22 = vpop.xlane.xlu1 %850 }
 0x47e   :  { %2015 = vrsqrt.f32 %v854_v21  ;;  %v853_v23 = vmul.f32 0.0078125, %v851_v22  ;;  %v1965_v21 = vld [vmem:[%s2797_s15 + $0x50] ss:$8 sps:$4 sm:$0xff]   ;;  %v1968_v22 = vld [vmem:[%s2797_s15 + $0x40] ss:$8 sps:$4 sm:$0xff]  }
 0x480   :  { %v855_v24 = vadd.f32 1e-05, %v853_v23  ;;  %v1970_v23 = vld [vmem:[%s2797_s15 + $0x44] ss:$8 sps:$4 sm:$0xff]  }
 0x482   :  { %2017 = vrsqrt.f32 %v855_v24  ;;  %v1973_v24 = vld [vmem:[%s2797_s15 + $0x34] ss:$8 sps:$4 sm:$0xff]  }
 0x48b   :  { %v2016_v25 = vpop.eup %2015 }
 0x48c   :  { %v858_v26 = vmul.f32 %v2016_v25, %v2538_v51  ;;  %v1971_v25 = vld [vmem:[%s2797_s15 + $0x30] ss:$8 sps:$4 sm:$0xff]  }
 0x48e   :  { %v867_v30 = vmul.f32 %v1722_v27, %v858_v26  ;;  %v1976_v26 = vld [vmem:[%s2797_s15 + $0x24] ss:$8 sps:$4 sm:$0xff]  }
 0x48f   :  { %v2018_v28 = vpop.eup %2017 }
 0x490   :  { %v859_v29 = vmul.f32 %v2018_v28, %v2542_v55  ;;  %v876_v33 = vadd.f32 %v1723_v31, %v867_v30  ;;  %v1979_v28 = vld [vmem:[%s2797_s15 + $0x14] ss:$8 sps:$4 sm:$0xff]   ;;  %v1982_v30 = vld [vmem:[%s2797_s15 + $0x4] ss:$8 sps:$4 sm:$0xff]  }
 0x492   :  { %v868_v32 = vmul.f32 %v1722_v27, %v859_v29  ;;  %v1974_v27 = vld [vmem:[%s2797_s15 + $0x20] ss:$8 sps:$4 sm:$0xff]   ;;  %v1977_v29 = vld [vmem:[%s2797_s15 + $0x10] ss:$8 sps:$4 sm:$0xff]  }
 0x494   :  { %v877_v34 = vadd.f32 %v1723_v31, %v868_v32  ;;  %v1980_v31 = vld [vmem:[%s2797_s15] ss:$8 sps:$4 sm:$0xff]   ;;  %v1983_v32 = vld [vmem:[%s2799_s17 + $0x78] sm:$0xff]  }
 0x496   :  { %v878_v35 = vpack.c.bf16 %v877_v34, %v876_v33 }
 0x498   :  { %1020 = vmatmul.mubr.bf16.vlgmr.msra.gmra.mxu0 %v878_v35  ;;  %v1986_v35 = vld [vmem:[%s2799_s17 + $0x30] sm:$0xff]  }
 0x499   :  { %1395 = vmatprep.mubr.bf16.mxu0 %v2049_v1  ;;  %v1957_v1 = vld [vmem:[%s2793_s11 + $0x40] sm:$0xff]   ;;  %1364 = vmatpush1.bf16.msra.mxu0 %v1959_v8 }
 0x49a   :  { %1808 = vmatprep.subr.bf16.mxu1 %v1957_v1  ;;  %1365 = vmatprep.subr.bf16.mxu0 %v1964_v18  ;;  %v1991_v1 = vld [vmem:[%s2799_s17 + $0x58] sm:$0xff]  }
 0x49b   :  { %1809 = vmatpush3.bf16.msra.mxu1 %v1958_v40  ;;  %v1992_v40 = vld [vmem:[%s2799_s17 + $0x18] sm:$0xff]  }
 0x49c   :  { %1816 = vmatprep.subr.bf16.mxu1 %v1983_v32 }
 0x49d   :  { %1366 = vmatpush1.bf16.msra.mxu0 %v1962_v19 }
 0x49e   :  { %1367 = vmatprep.subr.bf16.mxu0 %v1967_v20 }
 0x4a1   :  { %1368 = vmatpush1.bf16.msra.mxu0 %v1965_v21 }
 0x4a2   :  { %1369 = vmatprep.subr.bf16.mxu0 %v1970_v23 }
 0x4a5   :  { %1370 = vmatpush1.bf16.msra.mxu0 %v1968_v22 }
 0x4a6   :  { %1371 = vmatprep.subr.bf16.mxu0 %v1973_v24 }
 0x4a9   :  { %1372 = vmatpush1.bf16.msra.mxu0 %v1971_v25 }
 0x4aa   :  { %1373 = vmatprep.subr.bf16.mxu0 %v1976_v26 }
 0x4ad   :  { %1374 = vmatpush1.bf16.msra.mxu0 %v1974_v27 }
 0x4ae   :  { %1375 = vmatprep.subr.bf16.mxu0 %v1979_v28 }
 0x4b1   :  { %1376 = vmatpush1.bf16.msra.mxu0 %v1977_v29 }
 0x4b2   :  { %1377 = vmatprep.subr.bf16.mxu0 %v1982_v30 }
 0x4b5   :  { %1378 = vmatpush1.bf16.msra.mxu0 %v1980_v31 }
 0x558   :  { %v1021_v42 = vpop.f32.mrf.mxu0 }
 0x559   :  { %v1022_v50 = vadd.f32 %v1021_v42, %v900_v44 }
 0x55a   :  { %v1023_v45 = vpop.f32.mrf.mxu0 }
 0x55b   :  { %v1024_v48 = vadd.f32 %v1023_v45, %v904_v43  ;;  %v1030_v56 = vmax.f32 %v1022_v50, 0.0  ;;  %v1757_v50 = vld [vmem:[%s2795_s13] ss:$0 sm:$0xff] }
 0x55c   :  { %v1025_v47 = vpop.f32.mrf.mxu0 }
 0x55d   :  { %v1026_v49 = vadd.f32 %v1025_v47, %v900_v44  ;;  %v1031_v54 = vmax.f32 %v1024_v48, 0.0 }
 0x55e   :  { %v1027_v51 = vpop.f32.mrf.mxu0 }
 0x55f   :  { %v1028_v52 = vadd.f32 %v1027_v51, %v904_v43  ;;  %v1032_v53 = vmax.f32 %v1026_v49, 0.0 }
 0x561   :  { %v1033_v55 = vmax.f32 %v1028_v52, 0.0  ;;  %v1034_v58 = vpack.c.bf16 %v1032_v53, %v1030_v56 }
 0x563   :  { %v1035_v57 = vpack.c.bf16 %v1033_v55, %v1031_v54  ;;  %v1758_v54 = vld [vmem:[%s2796_s14] ss:$0 sm:$0xff] }
 0x565   :  { %1203 = vmatprep.mubr.bf16.mxu1 %v1035_v57 }
 0x566   :  { %1204 = vmatmul.mubr.bf16.vlgmr.msra.gmra.mxu1 %v1034_v58 }
 0x626   :  { %v1810_v59 = vpop.f32.mrf.mxu1 }
 0x628   :  { %v1811_v62 = vpop.f32.mrf.mxu1 }
 0x629   :  { %v1812_v63 = vadd.f32 %v1811_v62, %v1810_v59  ;;  %v1993_v59 = vld [vmem:[%s2799_s17 + $0x50] sm:$0xff]   ;;  %v1995_v62 = vld [vmem:[%s2799_s17 + $0x48] sm:$0xff]  }
 0x62a   :  { %v1813_v0 = vpop.f32.mrf.mxu1 }
 0x62b   :  { %v1206_v2 = vadd.f32 %v1812_v63, %v1740_v60  ;;  %v1996_v63 = vld [vmem:[%s2799_s17 + $0x8] sm:$0xff]  }
 0x62c   :  { %v1814_v3 = vpop.f32.mrf.mxu1 }
 0x62d   :  { %v1815_v4 = vadd.f32 %v1814_v3, %v1813_v0  ;;  %v1212_v5 = vadd.f32 %v1206_v2, %v876_v33  ;;  %v1984_v33 = vld [vmem:[%s2799_s17 + $0x38] sm:$0xff]   ;;  %v1997_v0 = vld [vmem:[%s2799_s17 + $0x40] sm:$0xff]  }
 0x62e   :  { %1817 = vmatpush3.bf16.msra.mxu1 %v1984_v33  ;;  %v1998_v2 = vld [vmem:[%s2799_s17] sm:$0xff]  }
 0x62f   :  { %v1209_v6 = vadd.f32 %v1815_v4, %v1740_v60  ;;  %1214 = vadd.xlane.f32.xlu0 %v1212_v5  ;;  %v1994_v60 = vld [vmem:[%s2799_s17 + $0x10] sm:$0xff]   ;;  %v1271_v3 = vld [vmem:[%s2798_s16] sm:$0x3] }
 0x631   :  { %v1213_v7 = vadd.f32 %v1209_v6, %v877_v34  ;;  %v1985_v34 = vld [vmem:[%s2799_s17 + $0x70] sm:$0xff]   ;;  %v1276_v6 = vrot.slane %v1271_v3, %v2522_v61 }
 0x632   :  { %1818 = vmatprep.subr.bf16.mxu1 %v1985_v34 }
 0x633   :  { %1216 = vadd.xlane.f32.xlu1 %v1213_v7  ;;  %1819 = vmatpush3.bf16.msra.mxu1 %v1986_v35 }
 0x634   :  { %1820 = vmatprep.subr.bf16.mxu1 %v1987_v36 }
 0x637   :  { %1821 = vmatpush3.bf16.msra.mxu1 %v1988_v37 }
 0x638   :  { %1822 = vmatprep.subr.bf16.mxu1 %v1989_v38 }
 0x63b   :  { %1823 = vmatpush3.bf16.msra.mxu1 %v1990_v39 }
 0x63c   :  { %1824 = vmatprep.subr.bf16.mxu1 %v1991_v1 }
 0x63f   :  { %1825 = vmatpush3.bf16.msra.mxu1 %v1992_v40 }
 0x640   :  { %1826 = vmatprep.subr.bf16.mxu1 %v1993_v59 }
 0x643   :  { %1827 = vmatpush3.bf16.msra.mxu1 %v1994_v60 }
 0x644   :  { %1828 = vmatprep.subr.bf16.mxu1 %v1995_v62 }
 0x647   :  { %1829 = vmatpush3.bf16.msra.mxu1 %v1996_v63 }
 0x648   :  { %1830 = vmatprep.subr.bf16.mxu1 %v1997_v0 }
 0x64b   :  { %1831 = vmatpush3.bf16.msra.mxu1 %v1998_v2 }
 0x6b8   :  { %v1215_v10 = vpop.xlane.xlu0 %1214 }
 0x6b9   :  { %v1218_v11 = vmul.f32 0.0078125, %v1215_v10 }
 0x6bb   :  { %v2659_v12 = vsub.f32 %v1212_v5, %v1218_v11  ;;  %v1280_v5 = vrot.slane %v1271_v3, %v2516_v46  ;;  %v1775_v46 = vld [vmem:[%s2800_s18] ss:$0 sm:$0xff] }
 0x6bc   :  { %v1217_v13 = vpop.xlane.xlu1 %1216 }
 0x6bd   :  { %v1219_v14 = vmul.f32 0.0078125, %v1217_v13  ;;  %v1222_v15 = vmul.f32 %v2659_v12, %v2659_v12 }
 0x6bf   :  { %v2663_v16 = vsub.f32 %v1213_v7, %v1219_v14  ;;  %1224 = vadd.xlane.f32.xlu0 %v1222_v15 }
 0x6c1   :  { %v1223_v17 = vmul.f32 %v2663_v16, %v2663_v16 }
 0x6c3   :  { %1226 = vadd.xlane.f32.xlu1 %v1223_v17 }
 0x748   :  { %v1225_v41 = vpop.xlane.xlu0 %1224 }
 0x749   :  { %v1228_v42 = vmul.f32 0.0078125, %v1225_v41 }
 0x74b   :  { %v1230_v43 = vadd.f32 1e-05, %v1228_v42 }
 0x74c   :  { %v1227_v44 = vpop.xlane.xlu1 %1226 }
 0x74d   :  { %2019 = vrsqrt.f32 %v1230_v43  ;;  %v1229_v45 = vmul.f32 0.0078125, %v1227_v44  ;;  %v1792_v43 = vld [vmem:[%s2801_s19] ss:$0 sm:$0xff] }
 0x74f   :  { %v1231_v47 = vadd.f32 1e-05, %v1229_v45  ;;  %v1793_v45 = vld [vmem:[%s2802_s20] ss:$0 sm:$0xff] }
 0x751   :  { %2021 = vrsqrt.f32 %v1231_v47 }
 0x75a   :  { %v2020_v48 = vpop.eup %2019 }
 0x75b   :  { %v1234_v49 = vmul.f32 %v2020_v48, %v2659_v12 }
 0x75d   :  { %v1243_v53 = vmul.f32 %v1757_v50, %v1234_v49 }
 0x75e   :  { %v2022_v51 = vpop.eup %2021 }
 0x75f   :  { %v1235_v52 = vmul.f32 %v2022_v51, %v2663_v16  ;;  %v1252_v56 = vadd.f32 %v1758_v54, %v1243_v53 }
 0x761   :  { %v1244_v55 = vmul.f32 %v1757_v50, %v1235_v52 }
 0x763   :  { %v1253_v57 = vadd.f32 %v1758_v54, %v1244_v55 }
 0x765   :  { %v1254_v58 = vpack.c.bf16 %v1253_v57, %v1252_v56 }
 0x767   :  { %1396 = vmatmul.mubr.bf16.vlgmr.msra.gmra.mxu0 %v1254_v58 }
 0x827   :  { %v1397_v4 = vpop.f32.mrf.mxu0 }
 0x828   :  { %v1398_v11 = vadd.f32 %v1397_v4, %v1276_v6 }
 0x829   :  { %v1399_v7 = vpop.f32.mrf.mxu0 }
 0x82a   :  { %v1400_v9 = vadd.f32 %v1399_v7, %v1280_v5  ;;  %v1406_v17 = vmax.f32 %v1398_v11, 0.0 }
 0x82b   :  { %v1401_v8 = vpop.f32.mrf.mxu0 }
 0x82c   :  { %v1402_v10 = vadd.f32 %v1401_v8, %v1276_v6  ;;  %v1407_v15 = vmax.f32 %v1400_v9, 0.0 }
 0x82d   :  { %v1403_v12 = vpop.f32.mrf.mxu0 }
 0x82e   :  { %v1404_v13 = vadd.f32 %v1403_v12, %v1280_v5  ;;  %v1408_v14 = vmax.f32 %v1402_v10, 0.0 }
 0x830   :  { %v1409_v16 = vmax.f32 %v1404_v13, 0.0  ;;  %v1410_v19 = vpack.c.bf16 %v1408_v14, %v1406_v17 }
 0x832   :  { %v1411_v18 = vpack.c.bf16 %v1409_v16, %v1407_v15 }
 0x834   :  { %1579 = vmatprep.mubr.bf16.mxu1 %v1411_v18 }
 0x835   :  { %1580 = vmatmul.mubr.bf16.vlgmr.msra.gmra.mxu1 %v1410_v19 }
 0x8f5   :  { %v1832_v20 = vpop.f32.mrf.mxu1 }
 0x8f7   :  { %v1833_v61 = vpop.f32.mrf.mxu1 }
 0x8f8   :  { %v1834_v21 = vadd.f32 %v1833_v61, %v1832_v20 }
 0x8f9   :  { %v1835_v22 = vpop.f32.mrf.mxu1 }
 0x8fa   :  { %v1582_v23 = vadd.f32 %v1834_v21, %v1775_v46 }
 0x8fb   :  { %v1836_v24 = vpop.f32.mrf.mxu1 }
 0x8fc   :  { %v1837_v25 = vadd.f32 %v1836_v24, %v1835_v22  ;;  %v1588_v26 = vadd.f32 %v1582_v23, %v1252_v56 }
 0x8fe   :  { %v1585_v27 = vadd.f32 %v1837_v25, %v1775_v46  ;;  %1590 = vadd.xlane.f32.xlu0 %v1588_v26 }
 0x900   :  { %v1589_v28 = vadd.f32 %v1585_v27, %v1253_v57 }
 0x902   :  { %1592 = vadd.xlane.f32.xlu1 %v1589_v28 }
 0x987   :  { %v1591_v29 = vpop.xlane.xlu0 %1590 }
 0x988   :  { %v1594_v30 = vmul.f32 0.0078125, %v1591_v29 }
 0x98a   :  { %v1596_v31 = vsub.f32 %v1588_v26, %v1594_v30 }
 0x98b   :  { %v1593_v32 = vpop.xlane.xlu1 %1592 }
 0x98c   :  { %v1595_v33 = vmul.f32 0.0078125, %v1593_v32  ;;  %v1598_v34 = vmul.f32 %v1596_v31, %v1596_v31 }
 0x98e   :  { %v1597_v35 = vsub.f32 %v1589_v28, %v1595_v33  ;;  %1600 = vadd.xlane.f32.xlu0 %v1598_v34 }
 0x990   :  { %v1599_v36 = vmul.f32 %v1597_v35, %v1597_v35 }
 0x992   :  { %1602 = vadd.xlane.f32.xlu1 %v1599_v36 }
 0xa17   :  { %v1601_v37 = vpop.xlane.xlu0 %1600 }
 0xa18   :  { %v1604_v38 = vmul.f32 0.0078125, %v1601_v37 }
 0xa1a   :  { %v1606_v39 = vadd.f32 1e-05, %v1604_v38 }
 0xa1b   :  { %v1603_v1 = vpop.xlane.xlu1 %1602 }
 0xa1c   :  { %2023 = vrsqrt.f32 %v1606_v39  ;;  %v1605_v40 = vmul.f32 0.0078125, %v1603_v1 }
 0xa1e   :  { %v1607_v41 = vadd.f32 1e-05, %v1605_v40 }
 0xa20   :  { %2025 = vrsqrt.f32 %v1607_v41 }
 0xa29   :  { %v2024_v42 = vpop.eup %2023 }
 0xa2a   :  { %v1610_v44 = vmul.f32 %v2024_v42, %v1596_v31 }
 0xa2c   :  { %v1619_v47 = vmul.f32 %v1792_v43, %v1610_v44 }
 0xa2d   :  { %v2026_v48 = vpop.eup %2025 }
 0xa2e   :  { %v1611_v49 = vmul.f32 %v2026_v48, %v1597_v35  ;;  %v1628_v50 = vadd.f32 %v1793_v45, %v1619_v47 }
 0xa30   :  { %v1620_v51 = vmul.f32 %v1792_v43, %v1611_v49  ;;  %1630 = vst [vmem:[#allocation2] sm:$0xff] %v1628_v50 }
 0xa32   :  { %v1629_v52 = vadd.f32 %v1793_v45, %v1620_v51 }
 0xa34   :  { %1631 = vst [vmem:[#allocation2 + $0x8] sm:$0xff] %v1629_v52 }
 0xa35   :  { %2038 = shalt.err (!%p2035_p4)
}
 0xa36   :  { %s2051_s19 = smov 128   ;;  %s2052_s20 = smov 8  }
 0xa37   :  { %1643 = dma.vmem_to_hbm [thread:$0]  %s1638_s12, 256, %s2803_s21, [#allocation3], %s2051_s19, %s2051_s19, %s2052_s20  }
 0xa38   :  { %2047 = dma.done.wait [#allocation3], 256  }
 0xa39   :  { %2048 = vsyncadd [#allocation3], 4294967040 }
 0xa3a   :  { %1647 = vsyncpa [#allocation3], 1 }

</bundles_post_ra>
